<compile_context>
chip_gen: v5e
topology: v5e:2x2
jax: 0.10.0
libtpu: 0.0.40
codegen_flags: <defaults>
</compile_context>

<pallas_src>
import functools

import jax
import jax.numpy as jnp
from jax.experimental import pallas as pl
from jax.experimental.pallas import tpu as pltpu

EPS = 1e-5        # PyTorch nn.LayerNorm default
NEG_INF = -1e30   # large-negative additive mask (avoids -inf NaN risk on padded rows)


# ----------------------------- kernel helpers ---------------------------------
def _layernorm(x, gamma, beta):
    mu = jnp.mean(x, axis=-1, keepdims=True)
    var = jnp.mean((x - mu) ** 2, axis=-1, keepdims=True)
    return (x - mu) * jax.lax.rsqrt(var + EPS) * gamma + beta


# ------------------------------- fused kernel -----------------------------------
def fused_text_encoder_kernel(tok_ref, pos_ref,
                              ln1_g, ln1_b, wqkv, bqkv, wo, bo,
                              ln2_g, ln2_b, wfc, bfc, wproj, bproj,
                              lnf_g, lnf_b,
                              o_ref, x_scr, *, num_heads):
    layer = pl.program_id(1)
    n_layers = pl.num_programs(1)

    btile, S, D = x_scr.shape
    H = num_heads
    hd = D // H
    M = btile * S
    scale = 1.0 / (hd ** 0.5)

    # causal additive mask generated in-kernel (no (S,S) HBM input per grid step)
    rows = jax.lax.broadcasted_iota(jnp.int32, (S, S), 0)
    cols = jax.lax.broadcasted_iota(jnp.int32, (S, S), 1)
    mask = jnp.where(cols <= rows, 0.0, NEG_INF).astype(jnp.float32)

    # fused embed-add on the first layer step
    @pl.when(layer == 0)
    def _():
        x_scr[...] = tok_ref[...] + pos_ref[...][None, :, :]

    x = x_scr[...].reshape(M, D)                          # (M, D) f32

    # ---- x = x + MHA(ln_1(x), causal_mask) ----
    h = _layernorm(x, ln1_g[...], ln1_b[...])
    qkv = jnp.dot(h.astype(jnp.bfloat16), wqkv[...],
                  preferred_element_type=jnp.float32) + bqkv[...]
    q, k, v = qkv[:, :D], qkv[:, D:2 * D], qkv[:, 2 * D:]

    ctx_parts = []
    for bi in range(btile):                               # static, tiny (btile <= 4)
        sl = slice(bi * S, (bi + 1) * S)
        qh = q[sl].reshape(S, H, hd).transpose(1, 0, 2).astype(jnp.bfloat16)
        kh = k[sl].reshape(S, H, hd).transpose(1, 0, 2).astype(jnp.bfloat16)
        vh = v[sl].reshape(S, H, hd).transpose(1, 0, 2).astype(jnp.bfloat16)
        sc = jnp.einsum('hqd,hkd->hqk', qh, kh,
                        preferred_element_type=jnp.float32) * scale
        sc = sc + mask[None, :, :]
        sc = sc - jnp.max(sc, axis=-1, keepdims=True)
        p = jnp.exp(sc)
        p = p * pl.reciprocal(jnp.sum(p, axis=-1, keepdims=True), approx=True)
        ctx = jnp.einsum('hqk,hkd->hqd', p.astype(jnp.bfloat16), vh,
                         preferred_element_type=jnp.float32)
        ctx_parts.append(ctx.transpose(1, 0, 2).reshape(S, D))
    ctx = ctx_parts[0] if btile == 1 else jnp.concatenate(ctx_parts, axis=0)

    attn = jnp.dot(ctx.astype(jnp.bfloat16), wo[...],
                   preferred_element_type=jnp.float32) + bo[...]
    x = x + attn

    # ---- x = x + MLP(ln_2(x)) ----
    h2 = _layernorm(x, ln2_g[...], ln2_b[...])
    h2 = jnp.dot(h2.astype(jnp.bfloat16), wfc[...],
                 preferred_element_type=jnp.float32) + bfc[...]
    # TODO(synk): OpenCLIP uses exact (erf) nn.GELU; tanh approximation kept for
    #             robust Mosaic lowering (O(1e-3) activation difference).
    h2 = jax.nn.gelu(h2, approximate=True)
    h2 = jnp.dot(h2.astype(jnp.bfloat16), wproj[...],
                 preferred_element_type=jnp.float32) + bproj[...]
    x = x + h2

    x_scr[...] = x.reshape(btile, S, D)

    # fused ln_final on the last layer step; output block stays VMEM-resident across
    # the layer axis and is written back to HBM once per batch tile.
    @pl.when(layer == n_layers - 1)
    def _():
        o_ref[...] = _layernorm(x, lnf_g[...], lnf_b[...]).reshape(btile, S, D)


# ------------------------------ pallas wrapper ----------------------------------
def _vmem_limit_bytes():
    # explicit scoped-VMEM limit with headroom under physical (64 MiB v7x, 128 v5e/v6e)
    try:
        return int(pltpu.get_tpu_info().vmem_capacity_bytes * 3 // 4)
    except Exception:
        return 48 * 1024 * 1024


def encode_with_transformer(tok_emb, pos_emb, stacked, lnf_g, lnf_b, *,
                            num_heads, btile=1):
    B, S, D = tok_emb.shape
    Lr = stacked["wqkv"].shape[0]            # resblocks actually run ('penultimate' = L-1)
    assert B % btile == 0
    grid = (B // btile, Lr)

    batch_map = lambda b, l: (b, 0, 0)
    layer_map = lambda b, l: (l, 0, 0)
    const_map = lambda b, l: (0, 0)

    layer_args = (stacked["ln1_g"], stacked["ln1_b"],
                  stacked["wqkv"], stacked["bqkv"],
                  stacked["wo"], stacked["bo"],
                  stacked["ln2_g"], stacked["ln2_b"],
                  stacked["wfc"], stacked["bfc"],
                  stacked["wproj"], stacked["bproj"])
    # leading layer dim is squeezed (None) -> kernel sees the 2-D per-layer tensor
    layer_specs = [pl.BlockSpec((None,) + a.shape[1:], layer_map) for a in layer_args]

    in_specs = ([pl.BlockSpec((btile, S, D), batch_map),      # token embeddings
                 pl.BlockSpec((S, D), const_map)]             # positional embedding
                + layer_specs
                + [pl.BlockSpec((1, D), const_map),           # ln_final gamma
                   pl.BlockSpec((1, D), const_map)])          # ln_final beta

    # advisory cost estimate (helps XLA schedule the surrounding gather / host work)
    H = num_heads
    flops = int(Lr * (24 * B * S * D * D + 4 * B * S * S * D))
    transcendentals = int(Lr * (B * H * S * S + 4 * B * S * D))
    bytes_accessed = int(Lr * 24 * D * D + 12 * B * S * D)

    return pl.pallas_call(
        functools.partial(fused_text_encoder_kernel, num_heads=num_heads),
        out_shape=jax.ShapeDtypeStruct((B, S, D), jnp.float32),
        grid=grid,
        in_specs=in_specs,
        out_specs=pl.BlockSpec((btile, S, D), batch_map),
        scratch_shapes=[pltpu.VMEM((btile, S, D), jnp.float32)],
        compiler_params=pltpu.CompilerParams(
            dimension_semantics=("parallel", "arbitrary"),
            vmem_limit_bytes=_vmem_limit_bytes()),
        cost_estimate=pl.CostEstimate(flops=flops,
                                      transcendentals=transcendentals,
                                      bytes_accessed=bytes_accessed),
    )(tok_emb, pos_emb, *layer_args, lnf_g, lnf_b)


# ------------------------- parameter init (deterministic) -----------------------
def init_params(key, vocab, S, D, H, L):
    """Torch-layout ([out, in]) per-block parameters, as loaded from a checkpoint."""
    scale = 0.02
    keys = jax.random.split(key, 2 + L)
    params = {
        "token_embedding": jax.random.normal(keys[0], (vocab, D), jnp.float32) * scale,
        "positional_embedding": jax.random.normal(keys[1], (S, D), jnp.float32) * scale,
        "ln_final_g": jnp.ones((1, D), jnp.float32),
        "ln_final_b": jnp.zeros((1, D), jnp.float32),
        "blocks": [],
    }
    for i in range(L):
        bk = jax.random.split(keys[2 + i], 4)
        params["blocks"].append(dict(
            ln1_g=jnp.ones((1, D), jnp.float32), ln1_b=jnp.zeros((1, D), jnp.float32),
            w_qkv=jax.random.normal(bk[0], (3 * D, D), jnp.float32) * scale,   # torch [out, in]
            b_qkv=jnp.zeros((1, 3 * D), jnp.float32),
            w_out=jax.random.normal(bk[1], (D, D), jnp.float32) * scale,
            b_out=jnp.zeros((1, D), jnp.float32),
            ln2_g=jnp.ones((1, D), jnp.float32), ln2_b=jnp.zeros((1, D), jnp.float32),
            w_fc=jax.random.normal(bk[2], (4 * D, D), jnp.float32) * scale,
            b_fc=jnp.zeros((1, 4 * D), jnp.float32),
            w_proj=jax.random.normal(bk[3], (D, 4 * D), jnp.float32) * scale,
            b_proj=jnp.zeros((1, D), jnp.float32),
        ))
    return params


def prepare_params(raw):
    """One-time prep: drop the final resblock ('penultimate'), stack the rest along a
    leading layer axis, transpose torch [out,in] -> [in,out], cast matmul weights bf16."""
    blocks = raw["blocks"][:-1]

    def stack(key, transpose=False, bf16=False):
        ws = [b[key].T if transpose else b[key] for b in blocks]
        w = jnp.stack(ws, axis=0)
        return w.astype(jnp.bfloat16) if bf16 else w

    stacked = dict(
        ln1_g=stack("ln1_g"), ln1_b=stack("ln1_b"),
        wqkv=stack("w_qkv", transpose=True, bf16=True), bqkv=stack("b_qkv"),
        wo=stack("w_out", transpose=True, bf16=True), bo=stack("b_out"),
        ln2_g=stack("ln2_g"), ln2_b=stack("ln2_b"),
        wfc=stack("w_fc", transpose=True, bf16=True), bfc=stack("b_fc"),
        wproj=stack("w_proj", transpose=True, bf16=True), bproj=stack("b_proj"),
    )
    return {
        "token_embedding": raw["token_embedding"],
        "positional_embedding": raw["positional_embedding"],
        "ln_final_g": raw["ln_final_g"],
        "ln_final_b": raw["ln_final_b"],
        "stacked": stacked,
    }


# ------------------------------- forward pass -----------------------------------
def frozen_openclip_embed(tokens, params, *, num_heads, btile=1):
    """encode_with_transformer: embed + pos, run all-but-last resblock, ln_final."""
    # token embedding gather is plain-JAX glue outside the kernel
    tok_emb = jnp.take(params["token_embedding"], tokens, axis=0)      # (B, S, D)
    return encode_with_transformer(
        tok_emb, params["positional_embedding"], params["stacked"],
        params["ln_final_g"], params["ln_final_b"],
        num_heads=num_heads, btile=btile)


# ------------------------------------ main ---------------------------------------
if __name__ == "__main__":
    B, S, D, H, L, VOCAB = 2, 8, 32, 4, 3, 100   # small stand-in for ViT-H-14 text tower

    key = jax.random.PRNGKey(0)
    pkey, tkey = jax.random.split(key)
    raw_params = init_params(pkey, VOCAB, S, D, H, L)
    params = prepare_params(raw_params)          # one-time stack / transpose / bf16 cast
    tokens = jax.random.randint(tkey, (B, S), 0, VOCAB, dtype=jnp.int32)

    z = frozen_openclip_embed(tokens, params, num_heads=H, btile=1)
    z = jax.block_until_ready(z)
    assert z.shape == (B, S, D) and z.dtype == jnp.float32
    assert bool(jnp.all(jnp.isfinite(z)))
    print("KERNEL_OK")
</pallas_src>

<mosaic_0001>
module attributes {stable_mosaic.version = 11 : i64} {
  func.func @fused_text_encoder_kernel(%arg0: i32, %arg1: i32, %arg2: memref<1x8x32xf32, #tpu.memory_space<vmem>>, %arg3: memref<8x32xf32, #tpu.memory_space<vmem>>, %arg4: memref<1x1x32xf32, #tpu.memory_space<vmem>>, %arg5: memref<1x1x32xf32, #tpu.memory_space<vmem>>, %arg6: memref<1x32x96xbf16, #tpu.memory_space<vmem>>, %arg7: memref<1x1x96xf32, #tpu.memory_space<vmem>>, %arg8: memref<1x32x32xbf16, #tpu.memory_space<vmem>>, %arg9: memref<1x1x32xf32, #tpu.memory_space<vmem>>, %arg10: memref<1x1x32xf32, #tpu.memory_space<vmem>>, %arg11: memref<1x1x32xf32, #tpu.memory_space<vmem>>, %arg12: memref<1x32x128xbf16, #tpu.memory_space<vmem>>, %arg13: memref<1x1x128xf32, #tpu.memory_space<vmem>>, %arg14: memref<1x128x32xbf16, #tpu.memory_space<vmem>>, %arg15: memref<1x1x32xf32, #tpu.memory_space<vmem>>, %arg16: memref<1x32xf32, #tpu.memory_space<vmem>>, %arg17: memref<1x32xf32, #tpu.memory_space<vmem>>, %arg18: memref<1x8x32xf32, #tpu.memory_space<vmem>>, %arg19: memref<1x8x32xf32, #tpu.memory_space<vmem>>) attributes {dimension_semantics = [#tpu.dimension_semantics<parallel>, #tpu.dimension_semantics<arbitrary>], iteration_bounds = array<i64: 2, 2>, scalar_prefetch = 0 : i64, scratch_operands = 1 : i64, tpu.core_type = #tpu.core_type<tc>, window_params = [{transform_indices = @transform_0, window_bounds = array<i64: 1, 8, 32>}, {pipeline_mode = #tpu.pipeline_mode<synchronous>, transform_indices = @transform_1, window_bounds = array<i64: 8, 32>}, {transform_indices = @transform_2, window_bounds = array<i64: 1, 1, 32>}, {transform_indices = @transform_3, window_bounds = array<i64: 1, 1, 32>}, {transform_indices = @transform_4, window_bounds = array<i64: 1, 32, 96>}, {transform_indices = @transform_5, window_bounds = array<i64: 1, 1, 96>}, {transform_indices = @transform_6, window_bounds = array<i64: 1, 32, 32>}, {transform_indices = @transform_7, window_bounds = array<i64: 1, 1, 32>}, {transform_indices = @transform_8, window_bounds = array<i64: 1, 1, 32>}, {transform_indices = @transform_9, window_bounds = array<i64: 1, 1, 32>}, {transform_indices = @transform_10, window_bounds = array<i64: 1, 32, 128>}, {transform_indices = @transform_11, window_bounds = array<i64: 1, 1, 128>}, {transform_indices = @transform_12, window_bounds = array<i64: 1, 128, 32>}, {transform_indices = @transform_13, window_bounds = array<i64: 1, 1, 32>}, {pipeline_mode = #tpu.pipeline_mode<synchronous>, transform_indices = @transform_14, window_bounds = array<i64: 1, 32>}, {pipeline_mode = #tpu.pipeline_mode<synchronous>, transform_indices = @transform_15, window_bounds = array<i64: 1, 32>}, {transform_indices = @transform_16, window_bounds = array<i64: 1, 8, 32>}]} {
    %0 = tpu.iota {dimensions = array<i32: 0>} : vector<8x8xi32>
    %1 = tpu.iota {dimensions = array<i32: 1>} : vector<8x8xi32>
    %2 = arith.cmpi sle, %1, %0 : vector<8x8xi32>
    %cst = arith.constant 0.000000e+00 : f32
    %cst_0 = arith.constant -1.000000e+30 : f32
    %3 = vector.broadcast %cst : f32 to vector<8x8xf32>
    %4 = vector.broadcast %cst_0 : f32 to vector<8x8xf32>
    %5 = arith.select %2, %3, %4 : vector<8x8xi1>, vector<8x8xf32>
    %c0_i32 = arith.constant 0 : i32
    %6 = arith.cmpi eq, %arg1, %c0_i32 : i32
    %7 = arith.extui %6 : i1 to i32
    %c0_i32_1 = arith.constant 0 : i32
    %8 = arith.cmpi ne, %7, %c0_i32_1 : i32
    scf.if %8 {
      %c0_67 = arith.constant 0 : index
      %c0_68 = arith.constant 0 : index
      %c0_69 = arith.constant 0 : index
      %147 = vector.load %arg2[%c0_67, %c0_68, %c0_69] : memref<1x8x32xf32, #tpu.memory_space<vmem>>, vector<1x8x32xf32>
      %c0_70 = arith.constant 0 : index
      %c0_71 = arith.constant 0 : index
      %148 = vector.load %arg3[%c0_70, %c0_71] : memref<8x32xf32, #tpu.memory_space<vmem>>, vector<8x32xf32>
      %149 = vector.shape_cast %148 : vector<8x32xf32> to vector<1x8x32xf32>
      %150 = arith.addf %147, %149 : vector<1x8x32xf32>
      %c0_72 = arith.constant 0 : index
      %c0_73 = arith.constant 0 : index
      %c0_74 = arith.constant 0 : index
      %151 = vector.load %arg19[%c0_72, %c0_73, %c0_74] : memref<1x8x32xf32, #tpu.memory_space<vmem>>, vector<1x8x32xf32>
      tpu.vector_store %arg19[%c0_72, %c0_73, %c0_74], %150 {strides = array<i32>} : memref<1x8x32xf32, #tpu.memory_space<vmem>>, vector<1x8x32xf32>,
    } else {
    }
    %c0 = arith.constant 0 : index
    %c0_2 = arith.constant 0 : index
    %c0_3 = arith.constant 0 : index
    %9 = vector.load %arg19[%c0, %c0_2, %c0_3] : memref<1x8x32xf32, #tpu.memory_space<vmem>>, vector<1x8x32xf32>
    %10 = vector.shape_cast %9 : vector<1x8x32xf32> to vector<8x32xf32>
    %c0_4 = arith.constant 0 : index
    %c0_5 = arith.constant 0 : index
    %c0_6 = arith.constant 0 : index
    %11 = vector.load %arg4[%c0_4, %c0_5, %c0_6] : memref<1x1x32xf32, #tpu.memory_space<vmem>>, vector<1x1x32xf32>
    %12 = vector.shape_cast %11 : vector<1x1x32xf32> to vector<1x32xf32>
    %c0_7 = arith.constant 0 : index
    %c0_8 = arith.constant 0 : index
    %c0_9 = arith.constant 0 : index
    %13 = vector.load %arg5[%c0_7, %c0_8, %c0_9] : memref<1x1x32xf32, #tpu.memory_space<vmem>>, vector<1x1x32xf32>
    %14 = vector.shape_cast %13 : vector<1x1x32xf32> to vector<1x32xf32>
    %cst_10 = arith.constant dense<0.000000e+00> : vector<8xf32>
    %15 = vector.multi_reduction <add>, %10, %cst_10 [1] : vector<8x32xf32> to vector<8xf32>
    %16 = vector.shape_cast %15 : vector<8xf32> to vector<8x1xf32>
    %cst_11 = arith.constant 3.200000e+01 : f32
    %17 = vector.broadcast %cst_11 : f32 to vector<8x1xf32>
    %18 = arith.divf %16, %17 : vector<8x1xf32>
    %19 = vector.broadcast %18 : vector<8x1xf32> to vector<8x32xf32>
    %20 = arith.subf %10, %19 : vector<8x32xf32>
    %21 = arith.mulf %20, %20 : vector<8x32xf32>
    %cst_12 = arith.constant dense<0.000000e+00> : vector<8xf32>
    %22 = vector.multi_reduction <add>, %21, %cst_12 [1] : vector<8x32xf32> to vector<8xf32>
    %23 = vector.shape_cast %22 : vector<8xf32> to vector<8x1xf32>
    %cst_13 = arith.constant 3.200000e+01 : f32
    %24 = vector.broadcast %cst_13 : f32 to vector<8x1xf32>
    %25 = arith.divf %23, %24 : vector<8x1xf32>
    %26 = vector.broadcast %18 : vector<8x1xf32> to vector<8x32xf32>
    %27 = arith.subf %10, %26 : vector<8x32xf32>
    %cst_14 = arith.constant 9.99999974E-6 : f32
    %28 = vector.broadcast %cst_14 : f32 to vector<8x1xf32>
    %29 = arith.addf %25, %28 : vector<8x1xf32>
    %30 = math.rsqrt %29 : vector<8x1xf32>
    %31 = vector.broadcast %30 : vector<8x1xf32> to vector<8x32xf32>
    %32 = arith.mulf %27, %31 : vector<8x32xf32>
    %33 = vector.broadcast %12 : vector<1x32xf32> to vector<8x32xf32>
    %34 = arith.mulf %32, %33 : vector<8x32xf32>
    %35 = vector.broadcast %14 : vector<1x32xf32> to vector<8x32xf32>
    %36 = arith.addf %34, %35 : vector<8x32xf32>
    %37 = arith.truncf %36 : vector<8x32xf32> to vector<8x32xbf16>
    %c0_15 = arith.constant 0 : index
    %c0_16 = arith.constant 0 : index
    %c0_17 = arith.constant 0 : index
    %38 = vector.load %arg6[%c0_15, %c0_16, %c0_17] : memref<1x32x96xbf16, #tpu.memory_space<vmem>>, vector<1x32x96xbf16>
    %39 = vector.shape_cast %38 : vector<1x32x96xbf16> to vector<32x96xbf16>
    %cst_18 = arith.constant dense<0.000000e+00> : vector<8x96xf32>
    %40 = tpu.matmul %37, %39, %cst_18 {dimension_numbers = #tpu.dot_dimension_numbers<[1], [0], [0], [1], [0, 0, 1, 1], [], []>} : vector<8x32xbf16>, vector<32x96xbf16>, vector<8x96xf32> -> vector<8x96xf32>
    %c0_19 = arith.constant 0 : index
    %c0_20 = arith.constant 0 : index
    %c0_21 = arith.constant 0 : index
    %41 = vector.load %arg7[%c0_19, %c0_20, %c0_21] : memref<1x1x96xf32, #tpu.memory_space<vmem>>, vector<1x1x96xf32>
    %42 = vector.shape_cast %41 : vector<1x1x96xf32> to vector<1x96xf32>
    %43 = vector.broadcast %42 : vector<1x96xf32> to vector<8x96xf32>
    %44 = arith.addf %40, %43 : vector<8x96xf32>
    %45 = vector.extract_strided_slice %44 {offsets = [0, 0], sizes = [8, 32], strides = [1, 1]} : vector<8x96xf32> to vector<8x32xf32>
    %46 = vector.extract_strided_slice %44 {offsets = [0, 32], sizes = [8, 32], strides = [1, 1]} : vector<8x96xf32> to vector<8x32xf32>
    %47 = vector.extract_strided_slice %44 {offsets = [0, 64], sizes = [8, 32], strides = [1, 1]} : vector<8x96xf32> to vector<8x32xf32>
    %48 = vector.shape_cast %45 : vector<8x32xf32> to vector<8x4x8xf32>
    %49 = tpu.transpose %48, [1, 0, 2] : vector<8x4x8xf32> -> vector<4x8x8xf32>
    %50 = arith.truncf %49 : vector<4x8x8xf32> to vector<4x8x8xbf16>
    %51 = vector.shape_cast %46 : vector<8x32xf32> to vector<8x4x8xf32>
    %52 = tpu.transpose %51, [1, 0, 2] : vector<8x4x8xf32> -> vector<4x8x8xf32>
    %53 = arith.truncf %52 : vector<4x8x8xf32> to vector<4x8x8xbf16>
    %54 = vector.shape_cast %47 : vector<8x32xf32> to vector<8x4x8xf32>
    %55 = tpu.transpose %54, [1, 0, 2] : vector<8x4x8xf32> -> vector<4x8x8xf32>
    %56 = arith.truncf %55 : vector<4x8x8xf32> to vector<4x8x8xbf16>
    "tpu.trace_start"() <{level = 10 : i32, message = "hqd,hkd->hqk"}> : () -> ()
    %cst_22 = arith.constant dense<0.000000e+00> : vector<4x8x8xf32>
    %57 = tpu.matmul %50, %53, %cst_22 {dimension_numbers = #tpu.dot_dimension_numbers<[2], [2], [1], [1], [0, 0, 0, 1, 1, 1], [0], [0]>} : vector<4x8x8xbf16>, vector<4x8x8xbf16>, vector<4x8x8xf32> -> vector<4x8x8xf32>
    "tpu.trace_stop"() : () -> ()
    %cst_23 = arith.constant 0.353553385 : f32
    %58 = vector.broadcast %cst_23 : f32 to vector<4x8x8xf32>
    %59 = arith.mulf %57, %58 : vector<4x8x8xf32>
    %60 = vector.shape_cast %5 : vector<8x8xf32> to vector<1x8x8xf32>
    %61 = vector.broadcast %60 : vector<1x8x8xf32> to vector<4x8x8xf32>
    %62 = arith.addf %59, %61 : vector<4x8x8xf32>
    %cst_24 = arith.constant dense<0xFF800000> : vector<4x8xf32>
    %63 = vector.multi_reduction <maximumf>, %62, %cst_24 [2] : vector<4x8x8xf32> to vector<4x8xf32>
    %64 = vector.shape_cast %63 : vector<4x8xf32> to vector<4x8x1xf32>
    %65 = vector.broadcast %64 : vector<4x8x1xf32> to vector<4x8x8xf32>
    %66 = arith.subf %62, %65 : vector<4x8x8xf32>
    %67 = math.exp %66 : vector<4x8x8xf32>
    %cst_25 = arith.constant dense<0.000000e+00> : vector<4x8xf32>
    %68 = vector.multi_reduction <add>, %67, %cst_25 [2] : vector<4x8x8xf32> to vector<4x8xf32>
    %69 = vector.shape_cast %68 : vector<4x8xf32> to vector<4x8x1xf32>
    %70 = tpu.reciprocal %69 {approx = true} : vector<4x8x1xf32> -> vector<4x8x1xf32>
    %71 = vector.broadcast %70 : vector<4x8x1xf32> to vector<4x8x8xf32>
    %72 = arith.mulf %67, %71 : vector<4x8x8xf32>
    %73 = arith.truncf %72 : vector<4x8x8xf32> to vector<4x8x8xbf16>
    "tpu.trace_start"() <{level = 10 : i32, message = "hqk,hkd->hqd"}> : () -> ()
    %cst_26 = arith.constant dense<0.000000e+00> : vector<4x8x8xf32>
    %74 = tpu.matmul %73, %56, %cst_26 {dimension_numbers = #tpu.dot_dimension_numbers<[2], [1], [1], [2], [0, 0, 0, 1, 1, 2], [0], [0]>} : vector<4x8x8xbf16>, vector<4x8x8xbf16>, vector<4x8x8xf32> -> vector<4x8x8xf32>
    "tpu.trace_stop"() : () -> ()
    %75 = tpu.transpose %74, [1, 0, 2] : vector<4x8x8xf32> -> vector<8x4x8xf32>
    %76 = vector.shape_cast %75 : vector<8x4x8xf32> to vector<8x32xf32>
    %77 = arith.truncf %76 : vector<8x32xf32> to vector<8x32xbf16>
    %c0_27 = arith.constant 0 : index
    %c0_28 = arith.constant 0 : index
    %c0_29 = arith.constant 0 : index
    %78 = vector.load %arg8[%c0_27, %c0_28, %c0_29] : memref<1x32x32xbf16, #tpu.memory_space<vmem>>, vector<1x32x32xbf16>
    %79 = vector.shape_cast %78 : vector<1x32x32xbf16> to vector<32x32xbf16>
    %cst_30 = arith.constant dense<0.000000e+00> : vector<8x32xf32>
    %80 = tpu.matmul %77, %79, %cst_30 {dimension_numbers = #tpu.dot_dimension_numbers<[1], [0], [0], [1], [0, 0, 1, 1], [], []>} : vector<8x32xbf16>, vector<32x32xbf16>, vector<8x32xf32> -> vector<8x32xf32>
    %c0_31 = arith.constant 0 : index
    %c0_32 = arith.constant 0 : index
    %c0_33 = arith.constant 0 : index
    %81 = vector.load %arg9[%c0_31, %c0_32, %c0_33] : memref<1x1x32xf32, #tpu.memory_space<vmem>>, vector<1x1x32xf32>
    %82 = vector.shape_cast %81 : vector<1x1x32xf32> to vector<1x32xf32>
    %83 = vector.broadcast %82 : vector<1x32xf32> to vector<8x32xf32>
    %84 = arith.addf %80, %83 : vector<8x32xf32>
    %85 = arith.addf %10, %84 : vector<8x32xf32>
    %c0_34 = arith.constant 0 : index
    %c0_35 = arith.constant 0 : index
    %c0_36 = arith.constant 0 : index
    %86 = vector.load %arg10[%c0_34, %c0_35, %c0_36] : memref<1x1x32xf32, #tpu.memory_space<vmem>>, vector<1x1x32xf32>
    %87 = vector.shape_cast %86 : vector<1x1x32xf32> to vector<1x32xf32>
    %c0_37 = arith.constant 0 : index
    %c0_38 = arith.constant 0 : index
    %c0_39 = arith.constant 0 : index
    %88 = vector.load %arg11[%c0_37, %c0_38, %c0_39] : memref<1x1x32xf32, #tpu.memory_space<vmem>>, vector<1x1x32xf32>
    %89 = vector.shape_cast %88 : vector<1x1x32xf32> to vector<1x32xf32>
    %cst_40 = arith.constant dense<0.000000e+00> : vector<8xf32>
    %90 = vector.multi_reduction <add>, %85, %cst_40 [1] : vector<8x32xf32> to vector<8xf32>
    %91 = vector.shape_cast %90 : vector<8xf32> to vector<8x1xf32>
    %cst_41 = arith.constant 3.200000e+01 : f32
    %92 = vector.broadcast %cst_41 : f32 to vector<8x1xf32>
    %93 = arith.divf %91, %92 : vector<8x1xf32>
    %94 = vector.broadcast %93 : vector<8x1xf32> to vector<8x32xf32>
    %95 = arith.subf %85, %94 : vector<8x32xf32>
    %96 = arith.mulf %95, %95 : vector<8x32xf32>
    %cst_42 = arith.constant dense<0.000000e+00> : vector<8xf32>
    %97 = vector.multi_reduction <add>, %96, %cst_42 [1] : vector<8x32xf32> to vector<8xf32>
    %98 = vector.shape_cast %97 : vector<8xf32> to vector<8x1xf32>
    %cst_43 = arith.constant 3.200000e+01 : f32
    %99 = vector.broadcast %cst_43 : f32 to vector<8x1xf32>
    %100 = arith.divf %98, %99 : vector<8x1xf32>
    %101 = vector.broadcast %93 : vector<8x1xf32> to vector<8x32xf32>
    %102 = arith.subf %85, %101 : vector<8x32xf32>
    %cst_44 = arith.constant 9.99999974E-6 : f32
    %103 = vector.broadcast %cst_44 : f32 to vector<8x1xf32>
    %104 = arith.addf %100, %103 : vector<8x1xf32>
    %105 = math.rsqrt %104 : vector<8x1xf32>
    %106 = vector.broadcast %105 : vector<8x1xf32> to vector<8x32xf32>
    %107 = arith.mulf %102, %106 : vector<8x32xf32>
    %108 = vector.broadcast %87 : vector<1x32xf32> to vector<8x32xf32>
    %109 = arith.mulf %107, %108 : vector<8x32xf32>
    %110 = vector.broadcast %89 : vector<1x32xf32> to vector<8x32xf32>
    %111 = arith.addf %109, %110 : vector<8x32xf32>
    %112 = arith.truncf %111 : vector<8x32xf32> to vector<8x32xbf16>
    %c0_45 = arith.constant 0 : index
    %c0_46 = arith.constant 0 : index
    %c0_47 = arith.constant 0 : index
    %113 = vector.load %arg12[%c0_45, %c0_46, %c0_47] : memref<1x32x128xbf16, #tpu.memory_space<vmem>>, vector<1x32x128xbf16>
    %114 = vector.shape_cast %113 : vector<1x32x128xbf16> to vector<32x128xbf16>
    %cst_48 = arith.constant dense<0.000000e+00> : vector<8x128xf32>
    %115 = tpu.matmul %112, %114, %cst_48 {dimension_numbers = #tpu.dot_dimension_numbers<[1], [0], [0], [1], [0, 0, 1, 1], [], []>} : vector<8x32xbf16>, vector<32x128xbf16>, vector<8x128xf32> -> vector<8x128xf32>
    %c0_49 = arith.constant 0 : index
    %c0_50 = arith.constant 0 : index
    %c0_51 = arith.constant 0 : index
    %116 = vector.load %arg13[%c0_49, %c0_50, %c0_51] : memref<1x1x128xf32, #tpu.memory_space<vmem>>, vector<1x1x128xf32>
    %117 = vector.shape_cast %116 : vector<1x1x128xf32> to vector<1x128xf32>
    %118 = vector.broadcast %117 : vector<1x128xf32> to vector<8x128xf32>
    %119 = arith.addf %115, %118 : vector<8x128xf32>
    %120 = arith.mulf %119, %119 : vector<8x128xf32>
    %121 = arith.mulf %119, %120 : vector<8x128xf32>
    %cst_52 = arith.constant 4.471500e-02 : f32
    %122 = vector.broadcast %cst_52 : f32 to vector<8x128xf32>
    %123 = arith.mulf %122, %121 : vector<8x128xf32>
    %124 = arith.addf %119, %123 : vector<8x128xf32>
    %cst_53 = arith.constant 0.797884583 : f32
    %125 = vector.broadcast %cst_53 : f32 to vector<8x128xf32>
    %126 = arith.mulf %125, %124 : vector<8x128xf32>
    %127 = math.tanh %126 : vector<8x128xf32>
    %cst_54 = arith.constant 1.000000e+00 : f32
    %128 = vector.broadcast %cst_54 : f32 to vector<8x128xf32>
    %129 = arith.addf %128, %127 : vector<8x128xf32>
    %cst_55 = arith.constant 5.000000e-01 : f32
    %130 = vector.broadcast %cst_55 : f32 to vector<8x128xf32>
    %131 = arith.mulf %130, %129 : vector<8x128xf32>
    %132 = arith.mulf %119, %131 : vector<8x128xf32>
    %133 = arith.truncf %132 : vector<8x128xf32> to vector<8x128xbf16>
    %c0_56 = arith.constant 0 : index
    %c0_57 = arith.constant 0 : index
    %c0_58 = arith.constant 0 : index
    %134 = vector.load %arg14[%c0_56, %c0_57, %c0_58] : memref<1x128x32xbf16, #tpu.memory_space<vmem>>, vector<1x128x32xbf16>
    %135 = vector.shape_cast %134 : vector<1x128x32xbf16> to vector<128x32xbf16>
    %cst_59 = arith.constant dense<0.000000e+00> : vector<8x32xf32>
    %136 = tpu.matmul %133, %135, %cst_59 {dimension_numbers = #tpu.dot_dimension_numbers<[1], [0], [0], [1], [0, 0, 1, 1], [], []>} : vector<8x128xbf16>, vector<128x32xbf16>, vector<8x32xf32> -> vector<8x32xf32>
    %c0_60 = arith.constant 0 : index
    %c0_61 = arith.constant 0 : index
    %c0_62 = arith.constant 0 : index
    %137 = vector.load %arg15[%c0_60, %c0_61, %c0_62] : memref<1x1x32xf32, #tpu.memory_space<vmem>>, vector<1x1x32xf32>
    %138 = vector.shape_cast %137 : vector<1x1x32xf32> to vector<1x32xf32>
    %139 = vector.broadcast %138 : vector<1x32xf32> to vector<8x32xf32>
    %140 = arith.addf %136, %139 : vector<8x32xf32>
    %141 = arith.addf %85, %140 : vector<8x32xf32>
    %142 = vector.shape_cast %141 : vector<8x32xf32> to vector<1x8x32xf32>
    %c0_63 = arith.constant 0 : index
    %c0_64 = arith.constant 0 : index
    %c0_65 = arith.constant 0 : index
    %143 = vector.load %arg19[%c0_63, %c0_64, %c0_65] : memref<1x8x32xf32, #tpu.memory_space<vmem>>, vector<1x8x32xf32>
    tpu.vector_store %arg19[%c0_63, %c0_64, %c0_65], %142 {strides = array<i32>} : memref<1x8x32xf32, #tpu.memory_space<vmem>>, vector<1x8x32xf32>,
    %c1_i32 = arith.constant 1 : i32
    %144 = arith.cmpi eq, %arg1, %c1_i32 : i32
    %145 = arith.extui %144 : i1 to i32
    %c0_i32_66 = arith.constant 0 : i32
    %146 = arith.cmpi ne, %145, %c0_i32_66 : i32
    scf.if %146 {
      %c0_67 = arith.constant 0 : index
      %c0_68 = arith.constant 0 : index
      %147 = vector.load %arg16[%c0_67, %c0_68] : memref<1x32xf32, #tpu.memory_space<vmem>>, vector<1x32xf32>
      %c0_69 = arith.constant 0 : index
      %c0_70 = arith.constant 0 : index
      %148 = vector.load %arg17[%c0_69, %c0_70] : memref<1x32xf32, #tpu.memory_space<vmem>>, vector<1x32xf32>
      %cst_71 = arith.constant dense<0.000000e+00> : vector<8xf32>
      %149 = vector.multi_reduction <add>, %141, %cst_71 [1] : vector<8x32xf32> to vector<8xf32>
      %150 = vector.shape_cast %149 : vector<8xf32> to vector<8x1xf32>
      %cst_72 = arith.constant 3.200000e+01 : f32
      %151 = vector.broadcast %cst_72 : f32 to vector<8x1xf32>
      %152 = arith.divf %150, %151 : vector<8x1xf32>
      %153 = vector.broadcast %152 : vector<8x1xf32> to vector<8x32xf32>
      %154 = arith.subf %141, %153 : vector<8x32xf32>
      %155 = arith.mulf %154, %154 : vector<8x32xf32>
      %cst_73 = arith.constant dense<0.000000e+00> : vector<8xf32>
      %156 = vector.multi_reduction <add>, %155, %cst_73 [1] : vector<8x32xf32> to vector<8xf32>
      %157 = vector.shape_cast %156 : vector<8xf32> to vector<8x1xf32>
      %cst_74 = arith.constant 3.200000e+01 : f32
      %158 = vector.broadcast %cst_74 : f32 to vector<8x1xf32>
      %159 = arith.divf %157, %158 : vector<8x1xf32>
      %160 = vector.broadcast %152 : vector<8x1xf32> to vector<8x32xf32>
      %161 = arith.subf %141, %160 : vector<8x32xf32>
      %cst_75 = arith.constant 9.99999974E-6 : f32
      %162 = vector.broadcast %cst_75 : f32 to vector<8x1xf32>
      %163 = arith.addf %159, %162 : vector<8x1xf32>
      %164 = math.rsqrt %163 : vector<8x1xf32>
      %165 = vector.broadcast %164 : vector<8x1xf32> to vector<8x32xf32>
      %166 = arith.mulf %161, %165 : vector<8x32xf32>
      %167 = vector.broadcast %147 : vector<1x32xf32> to vector<8x32xf32>
      %168 = arith.mulf %166, %167 : vector<8x32xf32>
      %169 = vector.broadcast %148 : vector<1x32xf32> to vector<8x32xf32>
      %170 = arith.addf %168, %169 : vector<8x32xf32>
      %171 = vector.shape_cast %170 : vector<8x32xf32> to vector<1x8x32xf32>
      %c0_76 = arith.constant 0 : index
      %c0_77 = arith.constant 0 : index
      %c0_78 = arith.constant 0 : index
      %172 = vector.load %arg18[%c0_76, %c0_77, %c0_78] : memref<1x8x32xf32, #tpu.memory_space<vmem>>, vector<1x8x32xf32>
      tpu.vector_store %arg18[%c0_76, %c0_77, %c0_78], %171 {strides = array<i32>} : memref<1x8x32xf32, #tpu.memory_space<vmem>>, vector<1x8x32xf32>,
    } else {
    }
    return
  }
  func.func @transform_0(%arg0: i32, %arg1: i32) -> (i32, i32, i32) {
    %c0_i32 = arith.constant 0 : i32
    %c0_i32_0 = arith.constant 0 : i32
    %c0_i32_1 = arith.constant 0 : i32
    return %arg0, %c0_i32, %c0_i32_0 : i32, i32, i32
  }
  func.func @transform_1(%arg0: i32, %arg1: i32) -> (i32, i32) {
    %c0_i32 = arith.constant 0 : i32
    %c0_i32_0 = arith.constant 0 : i32
    %c0_i32_1 = arith.constant 0 : i32
    return %c0_i32, %c0_i32_0 : i32, i32
  }
  func.func @transform_2(%arg0: i32, %arg1: i32) -> (i32, i32, i32) {
    %c0_i32 = arith.constant 0 : i32
    %c0_i32_0 = arith.constant 0 : i32
    %c0_i32_1 = arith.constant 0 : i32
    return %arg1, %c0_i32, %c0_i32_0 : i32, i32, i32
  }
  func.func @transform_3(%arg0: i32, %arg1: i32) -> (i32, i32, i32) {
    %c0_i32 = arith.constant 0 : i32
    %c0_i32_0 = arith.constant 0 : i32
    %c0_i32_1 = arith.constant 0 : i32
    return %arg1, %c0_i32, %c0_i32_0 : i32, i32, i32
  }
  func.func @transform_4(%arg0: i32, %arg1: i32) -> (i32, i32, i32) {
    %c0_i32 = arith.constant 0 : i32
    %c0_i32_0 = arith.constant 0 : i32
    %c0_i32_1 = arith.constant 0 : i32
    return %arg1, %c0_i32, %c0_i32_0 : i32, i32, i32
  }
  func.func @transform_5(%arg0: i32, %arg1: i32) -> (i32, i32, i32) {
    %c0_i32 = arith.constant 0 : i32
    %c0_i32_0 = arith.constant 0 : i32
    %c0_i32_1 = arith.constant 0 : i32
    return %arg1, %c0_i32, %c0_i32_0 : i32, i32, i32
  }
  func.func @transform_6(%arg0: i32, %arg1: i32) -> (i32, i32, i32) {
    %c0_i32 = arith.constant 0 : i32
    %c0_i32_0 = arith.constant 0 : i32
    %c0_i32_1 = arith.constant 0 : i32
    return %arg1, %c0_i32, %c0_i32_0 : i32, i32, i32
  }
  func.func @transform_7(%arg0: i32, %arg1: i32) -> (i32, i32, i32) {
    %c0_i32 = arith.constant 0 : i32
    %c0_i32_0 = arith.constant 0 : i32
    %c0_i32_1 = arith.constant 0 : i32
    return %arg1, %c0_i32, %c0_i32_0 : i32, i32, i32
  }
  func.func @transform_8(%arg0: i32, %arg1: i32) -> (i32, i32, i32) {
    %c0_i32 = arith.constant 0 : i32
    %c0_i32_0 = arith.constant 0 : i32
    %c0_i32_1 = arith.constant 0 : i32
    return %arg1, %c0_i32, %c0_i32_0 : i32, i32, i32
  }
  func.func @transform_9(%arg0: i32, %arg1: i32) -> (i32, i32, i32) {
    %c0_i32 = arith.constant 0 : i32
    %c0_i32_0 = arith.constant 0 : i32
    %c0_i32_1 = arith.constant 0 : i32
    return %arg1, %c0_i32, %c0_i32_0 : i32, i32, i32
  }
  func.func @transform_10(%arg0: i32, %arg1: i32) -> (i32, i32, i32) {
    %c0_i32 = arith.constant 0 : i32
    %c0_i32_0 = arith.constant 0 : i32
    %c0_i32_1 = arith.constant 0 : i32
    return %arg1, %c0_i32, %c0_i32_0 : i32, i32, i32
  }
  func.func @transform_11(%arg0: i32, %arg1: i32) -> (i32, i32, i32) {
    %c0_i32 = arith.constant 0 : i32
    %c0_i32_0 = arith.constant 0 : i32
    %c0_i32_1 = arith.constant 0 : i32
    return %arg1, %c0_i32, %c0_i32_0 : i32, i32, i32
  }
  func.func @transform_12(%arg0: i32, %arg1: i32) -> (i32, i32, i32) {
    %c0_i32 = arith.constant 0 : i32
    %c0_i32_0 = arith.constant 0 : i32
    %c0_i32_1 = arith.constant 0 : i32
    return %arg1, %c0_i32, %c0_i32_0 : i32, i32, i32
  }
  func.func @transform_13(%arg0: i32, %arg1: i32) -> (i32, i32, i32) {
    %c0_i32 = arith.constant 0 : i32
    %c0_i32_0 = arith.constant 0 : i32
    %c0_i32_1 = arith.constant 0 : i32
    return %arg1, %c0_i32, %c0_i32_0 : i32, i32, i32
  }
  func.func @transform_14(%arg0: i32, %arg1: i32) -> (i32, i32) {
    %c0_i32 = arith.constant 0 : i32
    %c0_i32_0 = arith.constant 0 : i32
    %c0_i32_1 = arith.constant 0 : i32
    return %c0_i32, %c0_i32_0 : i32, i32
  }
  func.func @transform_15(%arg0: i32, %arg1: i32) -> (i32, i32) {
    %c0_i32 = arith.constant 0 : i32
    %c0_i32_0 = arith.constant 0 : i32
    %c0_i32_1 = arith.constant 0 : i32
    return %c0_i32, %c0_i32_0 : i32, i32
  }
  func.func @transform_16(%arg0: i32, %arg1: i32) -> (i32, i32, i32) {
    %c0_i32 = arith.constant 0 : i32
    %c0_i32_0 = arith.constant 0 : i32
    %c0_i32_1 = arith.constant 0 : i32
    return %arg0, %c0_i32, %c0_i32_0 : i32, i32, i32
  }
}

</mosaic_0001>

<bundles_post_ra>
// kernel: tpu_custom_call.1
= control target key start
LH: loop header
LB: loop body
LE: loop exit
PB: predicated region body
PF: predicated region fallthrough
CT: control target
= control target key end

     0   :  { %s2909_s0 = inlined_call_operand.vmem [shape: f32[2,8,32], index: 0, kind: input, shape index: {}]   ;;  %s2910_s1 = inlined_call_operand.vmem [shape: f32[8,32], index: 1, kind: input, shape index: {}]   ;;  %s2911_s2 = inlined_call_operand.vmem [shape: f32[2,1,32], index: 2, kind: input, shape index: {}]   ;;  %s2912_s3 = inlined_call_operand.vmem [shape: f32[2,1,32], index: 3, kind: input, shape index: {}]   ;;  %s2913_s4 = inlined_call_operand.vmem [shape: bf16[2,32,96], index: 4, kind: input, shape index: {}]   ;;  %s2914_s5 = inlined_call_operand.vmem [shape: f32[2,1,96], index: 5, kind: input, shape index: {}]   ;;  %s2915_s6 = inlined_call_operand.vmem [shape: bf16[2,32,32], index: 6, kind: input, shape index: {}]   ;;  %s2916_s7 = inlined_call_operand.vmem [shape: f32[2,1,32], index: 7, kind: input, shape index: {}]   ;;  %s2917_s8 = inlined_call_operand.vmem [shape: f32[2,1,32], index: 8, kind: input, shape index: {}]   ;;  %s2918_s9 = inlined_call_operand.vmem [shape: f32[2,1,32], index: 9, kind: input, shape index: {}]   ;;  %s2919_s10 = inlined_call_operand.vmem [shape: bf16[2,32,128], index: 10, kind: input, shape index: {}]   ;;  %s2920_s11 = inlined_call_operand.vmem [shape: f32[2,1,128], index: 11, kind: input, shape index: {}]   ;;  %s2921_s12 = inlined_call_operand.vmem [shape: bf16[2,128,32], index: 12, kind: input, shape index: {}]   ;;  %s2922_s13 = inlined_call_operand.vmem [shape: f32[2,1,32], index: 13, kind: input, shape index: {}]   ;;  %s2923_s14 = inlined_call_operand.vmem [shape: f32[1,32], index: 14, kind: input, shape index: {}]   ;;  %s2924_s15 = inlined_call_operand.vmem [shape: f32[1,32], index: 15, kind: input, shape index: {}]   ;;  %s2925_s16 = inlined_call_operand.hbm [shape: f32[2,8,32], index: 16, kind: output, shape index: {}]  }
   0x1   :  { %2941 = sst [smem:[#allocation19_spill]] %s2909_s0 }
   0x2   :  { %2942 = sst [smem:[#allocation20_spill]] %s2910_s1 }
   0x3   :  { %2943 = sst [smem:[#allocation21_spill]] %s2912_s3 }
   0x4   :  { %2944 = sst [smem:[#allocation22_spill]] %s2913_s4 }
   0x5   :  { %2945 = sst [smem:[#allocation23_spill]] %s2915_s6 }
   0x6   :  { %2946 = sst [smem:[#allocation24_spill]] %s2923_s14 }
   0x7   :  { %2947 = sst [smem:[#allocation25_spill]] %s2924_s15 }
   0x8   :  { %2948 = sst [smem:[#allocation26_spill]] %s2925_s16 }
   0x9   :  { %21 = vsyncpa [#allocation4], 0 }
   0xa   :  { %23 = vsyncpa [#allocation4 + $0x1], 0  ;;  %s2410_s21 = smov 0   ;;  %s2412_s22 = smov 0  }
   0xb   :  { %s2414_s23 = smov 0   ;;  %s2416_s24 = smov 0  }
   0xc   :  { %s2418_s25 = smov 0   ;;  %s2420_s26 = smov 0  }
   0xd   :  { %s2422_s27 = smov 0   ;;  %s2424_s28 = smov 0  }
   0xe LB: > { %2949 = sst [smem:[#allocation6_spill]] %s2283_s21  ;;  %s1972_s29 = sadd.s32 4294967295, %s2311_s28   ;;  %s2311_s28 = sphi %s2424_s28, %s29_s28   ;;  %s2307_s27 = sphi %s2422_s27, %s2993_s27   ;;  %s2303_s26 = sphi %s2420_s26, %s2992_s26   ;;  %s2299_s25 = sphi %s2418_s25, %s2991_s25   ;;  %s2295_s24 = sphi %s2416_s24, %s2990_s24   ;;  %s2291_s23 = sphi %s2414_s23, %s2989_s23   ;;  %s2287_s22 = sphi %s2412_s22, %s2988_s22   ;;  %s2283_s21 = sphi %s2410_s21, %s2987_s21  }
   0xf   : > { %2950 = sst [smem:[#allocation7_spill]] %s2287_s22  ;;  %s1973_s30 = sadd.s32 4294967294, %s2311_s28  }
  0x10   : > { %2951 = sst [smem:[#allocation8_spill]] %s2291_s23  ;;  %s38_s0 = sadd.s32 1, %s2303_s26 }
  0x11   : > { %2952 = sst [smem:[#allocation9_spill]] %s2295_s24  ;;  %p39_p0 = scmp.ge.s32.totalorder %s38_s0, 2 }
  0x12   : > { %2953 = sst [smem:[#allocation10_spill]] %s2299_s25  ;;  %s41_s17 = sadd.s32 1, %s2307_s27 }
  0x13   : > { %2954 = sst [smem:[#allocation11_spill]] %s2303_s26  ;;  %p459_p1 = scmp.ne.s32.totalorder %s2291_s23, %s2287_s22 }
  0x14   : > { %2955 = sst [smem:[#allocation12_spill]] %s2307_s27  ;;  %p460_p2 = scmp.eq.s32.totalorder %s1972_s29, 3 }
  0x15   : > { %2956 = sst [smem:[#allocation13_spill]] %s2311_s28  ;;  %s2995_s0 = smov (%p39_p0, %s38_s0), 0 }
  0x16   : > { %2957 = sst [smem:[#allocation14_spill]] %s2995_s0  ;;  %s2997_s17 = smov (!%p39_p0, %s41_s17), %s2307_s27 }
  0x17   : > { %p2459_p3 = por %p460_p2, %p459_p1  ;;  %p465_p4 = scmp.ne.s32.totalorder %s2287_s22, %s2283_s21 }
  0x18   : > { %p43_p5 = scmp.ge.s32.totalorder %s2997_s17, 2  ;;  %p466_p6 = scmp.eq.s32.totalorder %s1973_s30, 3 }
  0x19   : > { %s2958_s18 = scalar_select %p2459_p3, 1, 0 }
  0x1a   : > { %p1976_p7 = scmp.ge.s32.totalorder %s2311_s28, 1  ;;  %p580_p8 = scmp.lt.s32.totalorder %s2311_s28, 5 }
  0x1b   : > { %2959 = sst [smem:[#allocation15_spill]] %s2958_s18  ;;  %s2999_s17 = smov (%p43_p5, %s2997_s17), 0 }
  0x1c   : > { %2960 = sst [smem:[#allocation16_spill]] %s2999_s17  ;;  %p2469_p9 = por %p466_p6, %p465_p4 }
  0x1d   : > { %p581_p10 = pnand %p1976_p7, %p580_p8  ;;  %s446_s20 = ssub.s32 %s2307_s27, %s2999_s17 }
  0x1e   : > { %s2961_s19 = scalar_select %p2469_p9, 1, 0 }
  0x1f   : > { %s449_s29 = sadd.s32 1, %s2291_s23  ;;  %p447_p11 = scmp.eq.s32.totalorder %s446_s20, 0 }
  0x20   : > { %2962 = sst [smem:[#allocation17_spill]] %s2961_s19  ;;  %584 = sbr.rel (%p581_p10) target bundleno = 2414 (0x96e), region = 84 }
  0x21   : > { %s2477_s0 = scalar_select %p447_p11, %s2291_s23, %s449_s29  }
  0x22   : > { %s2928_s30 = sand.u32 (!%p581_p10), 1, %s2287_s22   ;;  %p673_p12 = scmp.lt.s32.totalorder (!%p581_p10), %s2299_s25, 1 }
  0x23   : > { %2963 = sst [smem:[#allocation18_spill]] %s2477_s0  ;;  %s2483_s26 = sshll.u32 (!%p581_p10), %s2928_s30, 3 }
  0x24   : > { %p677_p13 = scmp.lt.s32.totalorder (!%p581_p10), %s2295_s24, 1  ;;  %s2964_s0 = sld [smem:[#allocation19_spill]] (!%p581_p10) }
  0x25   : > { %v722_v0 = vlaneseq  ;;  %s674_s17 = scalar_select %p673_p12, %s2299_s25, 1  ;;  %v2313_v3 = vmov -1e+30  }
  0x26   : > { %s2488_s20 = scalar_select %p677_p13, %s2295_s24, 1 }
  0x27   : > { %v723_v1 = vshrl.u32 %v722_v0, 7  ;;  %v725_v2 = vand.u32 127, %v722_v0  ;;  %s1978_s29 = sshll.u32 %s674_s17, 3  ;;  %s2966_s4 = sld [smem:[#allocation22_spill]] }
  0x28   : > { %s2060_s25 = sshll.u32 %s2488_s20, 4  ;;  %s2967_s6 = sld [smem:[#allocation23_spill]] }
  0x29   : > { %vm726_vm0 = vcmp.le.s32.totalorder %v725_v2, %v723_v1  ;;  %s2533_s24 = scalar_lea.vmem %s2919_s10, %s2060_s25  ;;  %s712_s27 = scalar_lea.vmem %s2920_s11, %s2488_s20 }
  0x2a   : > { %v2490_v4 = vsel %vm726_vm0, 0.0, %v2313_v3  ;;  %s676_s23 = scalar_lea.vmem %s2964_s0, %s1978_s29  ;;  %s720_s16 = scalar_lea.vmem %s2922_s13, %s2488_s20 }
  0x2b   : > { %s672_s15 = scalar_lea.vmem [#allocation3], %s2483_s26  ;;  %s2968_s17 = sld [smem:[#allocation9_spill]] }
  0x2d   : > { %s2507_s14 = scalar_lea.vmem %s2966_s4, %s2060_s25  ;;  %s704_s4 = scalar_lea.vmem %s2918_s9, %s2488_s20 }
  0x2e   : > { %s2516_s29 = scalar_lea.vmem %s2967_s6, %s2060_s25  ;;  %s2063_s6 = sshll.u32 %s2488_s20, 6 }
  0x2f   : > { %s2547_s28 = scalar_lea.vmem %s2921_s12, %s2063_s6 }
  0x31   : > { %p1987_p0 = scmp.ne.s32.totalorder %s2968_s17, 0 }
  0x32   : > { %s2969_s1 = sld [smem:[#allocation20_spill]] (!%p1987_p0) }
  0x33   : > { %731 = sbr.rel (%p1987_p0) target bundleno = 61 (0x3d), region = 88 }
  0x38   : > { %v732_v5 = vld [vmem:[%s676_s23] sm:$0xff]  ;;  %vm735_vm1 = vcmask 261120  }
  0x39   : > { %v733_v6 = vld [vmem:[%s2969_s1] sm:$0xff] }
  0x3a   : > { %v734_v7 = vadd.f32 %v733_v6, %v732_v5 }
  0x3c   : > { %736 = vst.msk [vmem:[#allocation2] sm:$0xff] %vm735_vm1, %v734_v7 }
  0x3d PF: > { %vm740_vm2 = vcmask 261120   ;;  %v2314_v10 = vmov 32.0   ;;  %v2065_v22 = vld [vmem:[%s2507_s14 + $0x8] sm:$0xff]  ;;  %v2064_v23 = vld [vmem:[%s2507_s14] sm:$0xff]  ;;  %s2970_s14 = scalar_lea.vmem %s2911_s2, %s2488_s20  ;;  %s2971_s21 = sld [smem:[#allocation21_spill]]  ;;  %vm826_vm7 = vcmask 1047556  }
  0x3e   : > { %2189 = vrcp.f32 %v2314_v10  ;;  %808 = vmatpush.bf16.msra.mxu0 %v2065_v22  ;;  %v2181_v33 = vld [vmem:[%s2970_s14] ss:$0 sm:$0xff]  ;;  %s2973_s17 = scalar_lea.vmem %s2914_s5, %s2488_s20  ;;  %s2315_s3 = smov 104   ;;  %v2319_v50 = vmov 1983009808   ;;  %vm1192_vm8 = vcmask 64512  }
  0x3f   : > { %v2183_v40 = vld [vmem:[%s2973_s17] ss:$0 sm:$0xff]  ;;  %s2316_s25 = smov 120   ;;  %s2317_s1 = smov 112   ;;  %v831_v51 = vunpack.c.l.s4 %v2319_v50  ;;  %v2320_v0 = vmov 1934713408  }
  0x40   : > { %s2318_s6 = smov 96   ;;  %v855_v1 = vunpack.c.l.s4 %v2320_v0  ;;  %s2321_s23 = smov 64   ;;  %vm1328_vm9 = vcmask 1043456   ;;  %vm1525_vm10 = vcmask 130048   ;;  %vm1527_vm11 = vcmask 195584  }
  0x41   : > { %v2590_v55 = vunpack.c.0.s8 %v831_v51  ;;  %s2322_s14 = smov 8   ;;  %s2323_s30 = smov 16  }
  0x42   : > { %809 = vmatpush.bf16.msra.mxu0 %v2064_v23  ;;  %v2600_v7 = vunpack.c.0.s8 %v855_v1  ;;  %s2324_s0 = smov 24   ;;  %s2974_s22 = scalar_lea.vmem %s2916_s7, %s2488_s20 }
  0x43   : > { %v2554_v8 = vld [vmem:[#allocation2] sm:$0xff]  ;;  %s2972_s19 = scalar_lea.vmem %s2971_s21, %s2488_s20  ;;  %s2975_s18 = scalar_lea.vmem %s2917_s8, %s2488_s20 }
  0x44   : > { %v741_v9 = vsel %vm740_vm2, %v2554_v8, 0.0  ;;  %v2190_v11 = vpop.eup %2189  ;;  %v2182_v36 = vld [vmem:[%s2972_s19] ss:$0 sm:$0xff] }
  0x45   : > { %742 = vadd.xlane.f32.xlu0 %v741_v9  ;;  %v745_v12 = vmul.f32 32.0, %v2190_v11  ;;  %vm749_vm3 = vweird.f32 %v2190_v11 }
  0x47   : > { %v746_v13 = vsub.f32 1.0, %v745_v12 }
  0x49   : > { %v747_v14 = vmul.f32 %v2190_v11, %v746_v13 }
  0x4b   : > { %v748_v15 = vadd.f32 %v2190_v11, %v747_v14 }
  0x4d   : > { %v2558_v16 = vsel %vm749_vm3, %v2190_v11, %v748_v15 }
  0xb8   : > { %v743_v17 = vpop.xlane.xlu0 %742 }
  0xb9   : > { %v751_v18 = vmul.f32 %v2558_v16, %v743_v17 }
  0xbb   : > { %v752_v19 = vsub.f32 %v2554_v8, %v751_v18 }
  0xbd   : > { %v753_v20 = vmul.f32 %v752_v19, %v752_v19 }
  0xbf   : > { %v754_v21 = vsel %vm740_vm2, %v753_v20, 0.0 }
  0xc0   : > { %755 = vadd.xlane.f32.xlu0 %v754_v21 }
 0x133   : > { %v756_v24 = vpop.xlane.xlu0 %755 }
 0x134   : > { %v757_v25 = vmul.f32 %v756_v24, %v2558_v16 }
 0x136   : > { %v758_v26 = vadd.f32 1e-05, %v757_v25 }
 0x138   : > { %2191 = vrsqrt.f32 %v758_v26  ;;  %vm765_vm5 = vweird.f32 %v758_v26 }
 0x13e   : > { %v2192_v27 = vpop.eup %2191 }
 0x13f   : > { %v760_v28 = vmul.f32 %v2192_v27, %v758_v26  ;;  %vm766_vm4 = vweird.f32 %v2192_v27 }
 0x140   : > { %vm767_vm6 = vmor %vm765_vm5, %vm766_vm4 }
 0x141   : > { %v761_v29 = vmul.f32 %v2192_v27, %v760_v28 }
 0x143   : > { %v762_v30 = vmul.f32 0.5, %v761_v29 }
 0x145   : > { %v763_v31 = vsub.f32 1.5, %v762_v30 }
 0x147   : > { %v764_v32 = vmul.f32 %v2192_v27, %v763_v31 }
 0x149   : > { %v768_v34 = vsel %vm767_vm6, %v2192_v27, %v764_v32 }
 0x14a   : > { %v769_v35 = vmul.f32 %v768_v34, %v752_v19 }
 0x14c   : > { %v773_v37 = vmul.f32 %v2181_v33, %v769_v35 }
 0x14e   : > { %v777_v38 = vadd.f32 %v2182_v36, %v773_v37 }
 0x150   : > { %v778_v39 = vpack.c.bf16 %v777_v38, %v777_v38 }
 0x152   : > { %1996 = vmatmul.msk.bf16.vlgmr.msra.gmra.mxu0 %vm740_vm2, %v778_v39 }
 0x1cf   : > { %v811_v41 = vpop.f32.mrf.mxu0 }
 0x1d0   : > { %v812_v42 = vadd.f32 %v2183_v40, %v811_v41 }
 0x1d2   : > { %822 = vrot.lane.b32.xlu2 %v812_v42, %s2315_s3  ;;  %816 = vrot.lane.b32.xlu1 %v812_v42, %s2316_s25  ;;  %v828_v52 = vrot.slane %v812_v42, 4 }
 0x1d7   : > { %v813_v43 = vpop.f32.mrf.mxu0 }
 0x1da   : > { %819 = vrot.lane.b32.xlu1 %v812_v42, %s2317_s1 }
 0x22c   : > { %v823_v46 = vpop.permute.xlu2 %822 }
 0x22d   : > { %v838_v59 = vrot.slane %v823_v46, 4 }
 0x244   : > { %v817_v44 = vpop.permute.xlu1 %816 }
 0x245   : > { %v2582_v45 = vpack.i.bf16 %v817_v44, %v812_v42  ;;  %v840_v56 = vrot.slane %v817_v44, 4  ;;  %v839_v60 = vsel %vm826_vm7, %v838_v59, %v817_v44 }
 0x246   : > { %v845_v2 = vperm.slane %v839_v60, %v2590_v55 }
 0x247   : > { %2162 = vrot.lane.b32.xlu2 %v2582_v45, %s2318_s6  ;;  %v841_v61 = vsel %vm826_vm7, %v823_v46, %v840_v56 }
 0x248   : > { %v849_v3 = vperm.slane %v841_v61, %v2590_v55  ;;  %v850_v9 = vrot.slane %v845_v2, 4 }
 0x24a   : > { %v862_v10 = vrot.slane %v849_v3, 4 }
 0x24c   : > { %v820_v47 = vpop.permute.xlu1 %819 }
 0x24d   : > { %v2585_v48 = vpack.i.bf16 %v823_v46, %v820_v47  ;;  %v825_v49 = vrot.slane %v820_v47, 4  ;;  %v829_v54 = vsel %vm826_vm7, %v820_v47, %v828_v52 }
 0x24e   : > { %v837_v58 = vperm.slane %v829_v54, %v2590_v55 }
 0x24f   : > { %2167 = vrot.lane.b32.xlu0 %v2585_v48, %s2318_s6  ;;  %v827_v53 = vsel %vm826_vm7, %v825_v49, %v812_v42 }
 0x250   : > { %v833_v57 = vperm.slane %v827_v53, %v2590_v55  ;;  %v864_v63 = vrot.slane %v837_v58, 4  ;;  %v863_v15 = vsel %vm826_vm7, %v862_v10, %v837_v58 }
 0x251   : > { %v869_v20 = vperm.slane %v863_v15, %v2600_v7 }
 0x252   : > { %v852_v62 = vrot.slane %v833_v57, 4  ;;  %v865_v6 = vsel %vm826_vm7, %v849_v3, %v864_v63  ;;  %v851_v14 = vsel %vm826_vm7, %v850_v9, %v833_v57 }
 0x253   : > { %v873_v12 = vperm.slane %v865_v6, %v2600_v7  ;;  %v857_v19 = vperm.slane %v851_v14, %v2600_v7  ;;  %v878_v29 = vrot.slane %v869_v20, 4 }
 0x254   : > { %v853_v5 = vsel %vm826_vm7, %v845_v2, %v852_v62 }
 0x255   : > { %v861_v11 = vperm.slane %v853_v5, %v2600_v7  ;;  %v880_v22 = vrot.slane %v873_v12, 4  ;;  %v874_v28 = vrot.slane %v857_v19, 4  ;;  %v879_v49 = vsel %vm826_vm7, 0.0, %v878_v29 }
 0x257   : > { %v876_v21 = vrot.slane %v861_v11, 4  ;;  %v881_v30 = vsel %vm826_vm7, 0.0, %v880_v22  ;;  %v893_v36 = vsel %vm826_vm7, %v880_v22, %v869_v20  ;;  %v875_v50 = vsel %vm826_vm7, 0.0, %v874_v28 }
 0x258   : > { %v898_v39 = vrot.slane %v881_v30, 4  ;;  %v897_v57 = vperm.slane %v893_v36, %v2590_v55 }
 0x259   : > { %v877_v31 = vsel %vm826_vm7, 0.0, %v876_v21  ;;  %v882_v51 = vsel %vm826_vm7, %v876_v21, %v857_v19 }
 0x25a   : > { %v887_v42 = vrot.slane %v877_v31, 4  ;;  %v899_v60 = vsel %vm826_vm7, %v898_v39, %v879_v49  ;;  %v886_v63 = vperm.slane %v882_v51, %v2590_v55  ;;  %v918_v12 = vrot.slane %v897_v57, 4 }
 0x25b   : > { %v903_v6 = vperm.slane %v899_v60, %v2590_v55 }
 0x25c   : > { %v888_v0 = vsel %vm826_vm7, %v887_v42, %v875_v50 }
 0x25d   : > { %v892_v15 = vperm.slane %v888_v0, %v2590_v55 }
 0x25f   : > { %v904_v36 = vrot.slane %v892_v15, 4 }
 0x261   : > { %v905_v50 = vsel %vm826_vm7, %v904_v36, %v886_v63 }
 0x2a1   : > { %v2163_v13 = vpop.permute.xlu2 %2162 }
 0x2a2   : > { %v2165_v17 = vunpack.i.h.bf16 %v2163_v13  ;;  %v2164_v18 = vunpack.i.l.bf16 %v2163_v13 }
 0x2a4   : > { %v966_v24 = vrot.slane %v2165_v17, 4  ;;  %v954_v25 = vrot.slane %v2164_v18, 4 }
 0x2c1   : > { %v2168_v23 = vpop.permute.xlu0 %2167 }
 0x2c2   : > { %v2170_v26 = vunpack.i.h.bf16 %v2168_v23  ;;  %v2169_v27 = vunpack.i.l.bf16 %v2168_v23 }
 0x2c4   : > { %v964_v32 = vrot.slane %v2170_v26, 4  ;;  %v967_v33 = vsel %vm826_vm7, %v2170_v26, %v966_v24  ;;  %v952_v34 = vrot.slane %v2169_v27, 4  ;;  %v955_v35 = vsel %vm826_vm7, %v2169_v27, %v954_v25 }
 0x2c5   : > { %v975_v37 = vperm.slane %v967_v33, %v2590_v55  ;;  %v963_v38 = vperm.slane %v955_v35, %v2590_v55  ;;  %v916_v25 = vrot.slane %v903_v6, 4 }
 0x2c6   : > { %v965_v40 = vsel %vm826_vm7, %v964_v32, %v2165_v17  ;;  %v953_v41 = vsel %vm826_vm7, %v952_v34, %v2164_v18  ;;  %v906_v17 = vrot.slane %v886_v63, 4  ;;  %v919_v32 = vsel %vm826_vm7, %v903_v6, %v918_v12 }
 0x2c7   : > { %v971_v43 = vperm.slane %v965_v40, %v2590_v55  ;;  %v988_v44 = vrot.slane %v975_v37, 4  ;;  %v959_v46 = vperm.slane %v953_v41, %v2590_v55  ;;  %v990_v47 = vrot.slane %v963_v38, 4 }
 0x2c8   : > { %v907_v31 = vsel %vm826_vm7, %v892_v15, %v906_v17  ;;  %v927_v42 = vperm.slane %v919_v32, %v2600_v7 }
 0x2c9   : > { %v976_v52 = vrot.slane %v971_v43, 4  ;;  %v978_v53 = vrot.slane %v959_v46, 4  ;;  %v989_v54 = vsel %vm826_vm7, %v988_v44, %v963_v38  ;;  %v991_v56 = vsel %vm826_vm7, %v975_v37, %v990_v47 }
 0x2ca   : > { %v995_v58 = vperm.slane %v989_v54, %v2600_v7  ;;  %v999_v59 = vperm.slane %v991_v56, %v2600_v7  ;;  %v917_v38 = vsel %vm826_vm7, %v916_v25, %v897_v57  ;;  %v915_v47 = vperm.slane %v907_v31, %v2600_v7 }
 0x2cb   : > { %v977_v61 = vsel %vm826_vm7, %v976_v52, %v959_v46  ;;  %v979_v62 = vsel %vm826_vm7, %v971_v43, %v978_v53  ;;  %v923_v51 = vperm.slane %v917_v38, %v2600_v7 }
 0x2cc   : > { %v983_v1 = vperm.slane %v977_v61, %v2600_v7  ;;  %v987_v2 = vperm.slane %v979_v62, %v2600_v7  ;;  %v1004_v3 = vrot.slane %v995_v58, 4  ;;  %v1006_v5 = vrot.slane %v999_v59, 4 }
 0x2cd   : > { %v911_v62 = vperm.slane %v905_v50, %v2600_v7 }
 0x2ce   : > { %v1000_v9 = vrot.slane %v983_v1, 4  ;;  %v1002_v10 = vrot.slane %v987_v2, 4  ;;  %v1007_v11 = vsel %vm826_vm7, 0.0, %v1006_v5  ;;  %v1019_v14 = vsel %vm826_vm7, %v1006_v5, %v995_v58 }
 0x2cf   : > { %v1024_v13 = vrot.slane %v1007_v11, 4  ;;  %v1005_v19 = vsel %vm826_vm7, 0.0, %v1004_v3  ;;  %v1023_v21 = vperm.slane %v1019_v14, %v2590_v55  ;;  %v932_v58 = vrot.slane %v927_v42, 4 }
 0x2d0   : > { %v1003_v18 = vsel %vm826_vm7, 0.0, %v1002_v10  ;;  %v1008_v20 = vsel %vm826_vm7, %v1002_v10, %v983_v1  ;;  %v1001_v26 = vsel %vm826_vm7, 0.0, %v1000_v9  ;;  %v934_v3 = vrot.slane %v915_v47, 4 }
 0x2d1   : > { %v1012_v22 = vperm.slane %v1008_v20, %v2590_v55  ;;  %v1013_v23 = vrot.slane %v1003_v18, 4  ;;  %v1025_v24 = vsel %vm826_vm7, %v1024_v13, %v1005_v19  ;;  %v1044_v28 = vrot.slane %v1023_v21, 4 }
 0x2d2   : > { %v1029_v27 = vperm.slane %v1025_v24, %v2590_v55  ;;  %v928_v5 = vrot.slane %v923_v51, 4  ;;  %v933_v11 = vsel %vm826_vm7, %v932_v58, %v915_v47  ;;  %v930_v12 = vrot.slane %v911_v62, 4 }
 0x2d3   : > { %v1014_v29 = vsel %vm826_vm7, %v1013_v23, %v1001_v26  ;;  %v1032_v30 = vrot.slane %v1012_v22, 4  ;;  %v935_v15 = vsel %vm826_vm7, %v927_v42, %v934_v3  ;;  %v938_v17 = vpack.c.bf16 %v933_v11, %v933_v11 }
 0x2d4   : > { %v1018_v33 = vperm.slane %v1014_v29, %v2590_v55  ;;  %v1045_v34 = vsel %vm826_vm7, %v1029_v27, %v1044_v28  ;;  %v1042_v35 = vrot.slane %v1029_v27, 4  ;;  %v929_v14 = vsel %vm826_vm7, %v928_v5, %v911_v62 }
 0x2d5   : > { %v1053_v37 = vperm.slane %v1045_v34, %v2600_v7  ;;  %v931_v18 = vsel %vm826_vm7, %v923_v51, %v930_v12  ;;  %v936_v19 = vpack.c.bf16 %v929_v14, %v929_v14  ;;  %v939_v20 = vpack.c.bf16 %v935_v15, %v935_v15 }
 0x2d6   : > { %v1033_v39 = vsel %vm826_vm7, %v1018_v33, %v1032_v30  ;;  %v1030_v40 = vrot.slane %v1018_v33, 4  ;;  %v1043_v41 = vsel %vm826_vm7, %v1042_v35, %v1023_v21  ;;  %v937_v21 = vpack.c.bf16 %v931_v18, %v931_v18 }
 0x2d7   : > { %v1041_v43 = vperm.slane %v1033_v39, %v2600_v7  ;;  %v1058_v44 = vrot.slane %v1053_v37, 4  ;;  %v1049_v46 = vperm.slane %v1043_v41, %v2600_v7 }
 0x2d8   : > { %v1031_v49 = vsel %vm826_vm7, %v1030_v40, %v1012_v22 }
 0x2d9   : > { %v1059_v52 = vsel %vm826_vm7, %v1058_v44, %v1041_v43  ;;  %v1037_v53 = vperm.slane %v1031_v49, %v2600_v7  ;;  %v1054_v54 = vrot.slane %v1049_v46, 4  ;;  %v1060_v56 = vrot.slane %v1041_v43, 4 }
 0x2da   : > { %v1064_v57 = vpack.c.bf16 %v1059_v52, %v1059_v52 }
 0x2db   : > { %v1055_v59 = vsel %vm826_vm7, %v1054_v54, %v1037_v53  ;;  %v1061_v60 = vsel %vm826_vm7, %v1053_v37, %v1060_v56  ;;  %v1056_v61 = vrot.slane %v1037_v53, 4 }
 0x2dc   : > { %v1235_v0 = vsel %vm1192_vm8, %v1064_v57, 0  ;;  %v1062_v63 = vpack.c.bf16 %v1055_v59, %v1055_v59  ;;  %v1065_v1 = vpack.c.bf16 %v1061_v60, %v1061_v60 }
 0x2dd   : > { %1244 = vmatpush.bf16.xpose.msra.mxu3 %v1235_v0  ;;  %v1057_v2 = vsel %vm826_vm7, %v1049_v46, %v1056_v61 }
 0x2de   : > { %v1197_v6 = vsel %vm1192_vm8, %v1062_v63, 0  ;;  %v1254_v9 = vsel %vm1192_vm8, %v1065_v1, 0  ;;  %v1063_v10 = vpack.c.bf16 %v1057_v2, %v1057_v2 }
 0x2df   : > { %1206 = vmatpush.bf16.xpose.msra.mxu1 %v1197_v6  ;;  %1263 = vmatpush.bf16.xpose.msrb.mxu0 %v1254_v9 }
 0x2e0   : > { %v1216_v13 = vsel %vm1192_vm8, %v1063_v10, 0 }
 0x2e1   : > { %1225 = vmatpush.bf16.xpose.msra.mxu2 %v1216_v13 }
 0x2e4   : > { %1999 = vmatmul.msk.bf16.vlgmr.msra.gmra.mxu3 %vm1192_vm8, %v938_v17 }
 0x2e6   : > { %1997 = vmatmul.msk.bf16.vlgmr.msra.gmra.mxu1 %vm1192_vm8, %v936_v19  ;;  %2000 = vmatmul.msk.bf16.vlgmr.msrb.gmra.mxu0 %vm1192_vm8, %v939_v20 }
 0x2e8   : > { %1998 = vmatmul.msk.bf16.vlgmr.msra.gmra.mxu2 %vm1192_vm8, %v937_v21 }
 0x363   : > { %v1208_v22 = vpop.f32.mrf.mxu1  ;;  %v1265_v23 = vpop.f32.mrf.mxu0 }
 0x364   : > { %v1269_v24 = vmul.f32 0.35355338, %v1208_v22  ;;  %v1272_v25 = vmul.f32 0.35355338, %v1265_v23 }
 0x366   : > { %v1273_v26 = vadd.f32 %v1269_v24, %v2490_v4  ;;  %v1276_v27 = vadd.f32 %v1272_v25, %v2490_v4 }
 0x367   : > { %v1246_v28 = vpop.f32.mrf.mxu3 }
 0x368   : > { %v1271_v29 = vmul.f32 0.35355338, %v1246_v28  ;;  %v1286_v30 = vsel %vm1192_vm8, %v1276_v27, -inf  ;;  %v1277_v31 = vsel %vm1192_vm8, %v1273_v26, -inf }
 0x369   : > { %1287 = vmax.xlane.f32.xlu2 %v1286_v30  ;;  %1278 = vmax.xlane.f32.xlu0 %v1277_v31 }
 0x36a   : > { %v1275_v32 = vadd.f32 %v1271_v29, %v2490_v4 }
 0x36b   : > { %v1210_v33 = vpop.f32.mrf.mxu1  ;;  %v1227_v34 = vpop.f32.mrf.mxu2 }
 0x36c   : > { %v1270_v35 = vmul.f32 0.35355338, %v1227_v34  ;;  %v1267_v36 = vpop.f32.mrf.mxu0  ;;  %v1283_v37 = vsel %vm1192_vm8, %v1275_v32, -inf }
 0x36d   : > { %1284 = vmax.xlane.f32.xlu1 %v1283_v37 }
 0x36e   : > { %v1274_v38 = vadd.f32 %v1270_v35, %v2490_v4 }
 0x36f   : > { %v1248_v39 = vpop.f32.mrf.mxu3 }
 0x370   : > { %v1280_v40 = vsel %vm1192_vm8, %v1274_v38, -inf }
 0x371   : > { %1281 = vmax.xlane.f32.xlu2 %v1280_v40 }
 0x373   : > { %v1229_v41 = vpop.f32.mrf.mxu2 }
 0x386   : > { %2172 = vrot.lane.b32.xlu1 %v2582_v45, %s2321_s23 }
 0x389   : > { %2177 = vrot.lane.b32.xlu2 %v2585_v48, %s2321_s23 }
 0x3dc   : > { %v1288_v42 = vpop.xlane.xlu2 %1287  ;;  %v1279_v46 = vpop.xlane.xlu0 %1278 }
 0x3dd   : > { %v1292_v43 = vsub.f32 %v1276_v27, %v1288_v42  ;;  %v1289_v50 = vsub.f32 %v1273_v26, %v1279_v46 }
 0x3df   : > { %v1299_v44 = vmul.f32 1.442695, %v1292_v43  ;;  %v1293_v54 = vmul.f32 1.442695, %v1289_v50 }
 0x3e0   : > { %v1285_v47 = vpop.xlane.xlu1 %1284 }
 0x3e1   : > { %2193 = vpow2.f32 %v1299_v44  ;;  %v1291_v49 = vsub.f32 %v1275_v32, %v1285_v47 }
 0x3e3   : > { %v1297_v51 = vmul.f32 1.442695, %v1291_v49 }
 0x3e4   : > { %v1282_v4 = vpop.xlane.xlu2 %1281 }
 0x3e5   : > { %2195 = vpow2.f32 %v1297_v51  ;;  %v1290_v52 = vsub.f32 %v1274_v38, %v1282_v4 }
 0x3e7   : > { %v2690_v53 = vpop.eup %2193  ;;  %v1295_v56 = vmul.f32 1.442695, %v1290_v52 }
 0x3e8   : > { %v1310_v45 = vsel %vm1192_vm8, %v2690_v53, 0.0 }
 0x3e9   : > { %2197 = vpow2.f32 %v1295_v56  ;;  %1311 = vadd.xlane.f32.xlu2 %v1310_v45 }
 0x3ea   : > { %2199 = vpow2.f32 %v1293_v54 }
 0x3eb   : > { %v2694_v48 = vpop.eup %2195 }
 0x3ec   : > { %v1307_v57 = vsel %vm1192_vm8, %v2694_v48, 0.0  ;;  %v2178_v61 = vpop.permute.xlu2 %2177 }
 0x3ed   : > { %1308 = vadd.xlane.f32.xlu0 %v1307_v57  ;;  %v2180_v0 = vunpack.i.h.bf16 %v2178_v61  ;;  %v2179_v63 = vunpack.i.l.bf16 %v2178_v61 }
 0x3ef   : > { %v2698_v58 = vpop.eup %2197  ;;  %v1090_v2 = vrot.slane %v2180_v0, 4  ;;  %v1078_v3 = vrot.slane %v2179_v63, 4 }
 0x3f0   : > { %v1304_v59 = vsel %vm1192_vm8, %v2698_v58, 0.0  ;;  %v2702_v60 = vpop.eup %2199 }
 0x3f1   : > { %1305 = vadd.xlane.f32.xlu1 %v1304_v59  ;;  %v1301_v62 = vsel %vm1192_vm8, %v2702_v60, 0.0 }
 0x3f5   : > { %1302 = vadd.xlane.f32.xlu0 %v1301_v62 }
 0x3f8   : > { %v2173_v1 = vpop.permute.xlu1 %2172 }
 0x3f9   : > { %v2175_v5 = vunpack.i.h.bf16 %v2173_v1  ;;  %v2174_v6 = vunpack.i.l.bf16 %v2173_v1 }
 0x3fb   : > { %v1092_v9 = vrot.slane %v2175_v5, 4  ;;  %v1079_v10 = vsel %vm826_vm7, %v1078_v3, %v2174_v6  ;;  %v1080_v11 = vrot.slane %v2174_v6, 4  ;;  %v1091_v12 = vsel %vm826_vm7, %v1090_v2, %v2175_v5 }
 0x3fc   : > { %v1085_v13 = vperm.slane %v1079_v10, %v2590_v55  ;;  %v1097_v14 = vperm.slane %v1091_v12, %v2590_v55 }
 0x3fd   : > { %v1081_v15 = vsel %vm826_vm7, %v2179_v63, %v1080_v11  ;;  %v1093_v17 = vsel %vm826_vm7, %v2180_v0, %v1092_v9 }
 0x3fe   : > { %v1089_v18 = vperm.slane %v1081_v15, %v2590_v55  ;;  %v1101_v19 = vperm.slane %v1093_v17, %v2590_v55  ;;  %v1102_v20 = vrot.slane %v1097_v14, 4  ;;  %v1104_v21 = vrot.slane %v1085_v13, 4 }
 0x400   : > { %v1103_v22 = vsel %vm826_vm7, %v1102_v20, %v1085_v13  ;;  %v1105_v23 = vsel %vm826_vm7, %v1097_v14, %v1104_v21  ;;  %v1114_v24 = vrot.slane %v1101_v19, 4  ;;  %v1116_v25 = vrot.slane %v1089_v18, 4 }
 0x401   : > { %v1109_v26 = vperm.slane %v1103_v22, %v2600_v7  ;;  %v1113_v27 = vperm.slane %v1105_v23, %v2600_v7 }
 0x402   : > { %v1115_v28 = vsel %vm826_vm7, %v1114_v24, %v1089_v18  ;;  %v1117_v29 = vsel %vm826_vm7, %v1101_v19, %v1116_v25 }
 0x403   : > { %v1121_v30 = vperm.slane %v1115_v28, %v2600_v7  ;;  %v1125_v31 = vperm.slane %v1117_v29, %v2600_v7  ;;  %v1126_v32 = vrot.slane %v1109_v26, 4  ;;  %v1128_v33 = vrot.slane %v1113_v27, 4 }
 0x405   : > { %v1129_v34 = vsel %vm826_vm7, 0.0, %v1128_v33  ;;  %v1130_v35 = vrot.slane %v1121_v30, 4  ;;  %v1132_v36 = vrot.slane %v1125_v31, 4  ;;  %v1134_v37 = vsel %vm826_vm7, %v1128_v33, %v1109_v26 }
 0x406   : > { %v1139_v38 = vrot.slane %v1129_v34, 4  ;;  %v1127_v39 = vsel %vm826_vm7, 0.0, %v1126_v32  ;;  %v1138_v41 = vperm.slane %v1134_v37, %v2590_v55 }
 0x407   : > { %v1133_v40 = vsel %vm826_vm7, 0.0, %v1132_v36  ;;  %v1145_v42 = vsel %vm826_vm7, %v1132_v36, %v1121_v30  ;;  %v1131_v47 = vsel %vm826_vm7, 0.0, %v1130_v35 }
 0x408   : > { %v1150_v43 = vrot.slane %v1133_v40, 4  ;;  %v1140_v44 = vsel %vm826_vm7, %v1139_v38, %v1127_v39  ;;  %v1149_v46 = vperm.slane %v1145_v42, %v2590_v55  ;;  %v1158_v50 = vrot.slane %v1138_v41, 4 }
 0x409   : > { %v1144_v49 = vperm.slane %v1140_v44, %v2590_v55 }
 0x40a   : > { %v1151_v51 = vsel %vm826_vm7, %v1150_v43, %v1131_v47  ;;  %v1170_v4 = vrot.slane %v1149_v46, 4 }
 0x40b   : > { %v1155_v52 = vperm.slane %v1151_v51, %v2590_v55  ;;  %v1159_v54 = vsel %vm826_vm7, %v1144_v49, %v1158_v50  ;;  %v1156_v56 = vrot.slane %v1144_v49, 4 }
 0x40c   : > { %v1167_v45 = vperm.slane %v1159_v54, %v2600_v7 }
 0x40d   : > { %v1171_v57 = vsel %vm826_vm7, %v1155_v52, %v1170_v4  ;;  %v1157_v59 = vsel %vm826_vm7, %v1156_v56, %v1138_v41  ;;  %v1168_v61 = vrot.slane %v1155_v52, 4 }
 0x40e   : > { %v1179_v62 = vperm.slane %v1171_v57, %v2600_v7  ;;  %v1186_v0 = vrot.slane %v1167_v45, 4  ;;  %v1163_v63 = vperm.slane %v1157_v59, %v2600_v7 }
 0x40f   : > { %v1169_v1 = vsel %vm826_vm7, %v1168_v61, %v1149_v46 }
 0x410   : > { %v1187_v2 = vsel %vm826_vm7, %v1179_v62, %v1186_v0  ;;  %v1175_v3 = vperm.slane %v1169_v1, %v2600_v7  ;;  %v1182_v5 = vrot.slane %v1163_v63, 4  ;;  %v1184_v6 = vrot.slane %v1179_v62, 4 }
 0x411   : > { %v1191_v9 = vpack.c.bf16 %v1187_v2, %v1187_v2 }
 0x412   : > { %v1183_v10 = vsel %vm826_vm7, %v1175_v3, %v1182_v5  ;;  %v1185_v11 = vsel %vm826_vm7, %v1184_v6, %v1167_v45  ;;  %v1180_v12 = vrot.slane %v1175_v3, 4 }
 0x413   : > { %v1387_v13 = vsel %vm1328_vm9, %v1191_v9, 0  ;;  %v1189_v14 = vpack.c.bf16 %v1183_v10, %v1183_v10  ;;  %v1190_v15 = vpack.c.bf16 %v1185_v11, %v1185_v11 }
 0x414   : > { %1396 = vmatpush.bf16.msra.mxu0 %v1387_v13  ;;  %v1181_v17 = vsel %vm826_vm7, %v1180_v12, %v1163_v63 }
 0x415   : > { %v1349_v18 = vsel %vm1328_vm9, %v1189_v14, 0  ;;  %v1368_v19 = vsel %vm1328_vm9, %v1190_v15, 0  ;;  %v1188_v20 = vpack.c.bf16 %v1181_v17, %v1181_v17 }
 0x416   : > { %1358 = vmatpush.bf16.msrb.mxu2 %v1349_v18  ;;  %1377 = vmatpush.bf16.msrb.mxu3 %v1368_v19 }
 0x417   : > { %v1330_v21 = vsel %vm1328_vm9, %v1188_v20, 0 }
 0x418   : > { %1339 = vmatpush.bf16.msrb.mxu1 %v1330_v21 }
 0x45c   : > { %v1312_v22 = vpop.xlane.xlu2 %1311 }
 0x45d   : > { %2201 = vrcp.f32 %v1312_v22 }
 0x460   : > { %v1309_v23 = vpop.xlane.xlu0 %1308 }
 0x461   : > { %2203 = vrcp.f32 %v1309_v23 }
 0x463   : > { %v2202_v24 = vpop.eup %2201 }
 0x464   : > { %v1320_v25 = vmul.f32 %v2202_v24, %v2690_v53  ;;  %v1306_v26 = vpop.xlane.xlu1 %1305 }
 0x465   : > { %2205 = vrcp.f32 %v1306_v26 }
 0x466   : > { %v1324_v27 = vpack.c.bf16 %v1320_v25, %v1320_v25 }
 0x467   : > { %v2204_v28 = vpop.eup %2203 }
 0x468   : > { %v1319_v29 = vmul.f32 %v2204_v28, %v2694_v48  ;;  %2004 = vmatmul.msk.bf16.vlgmr.msra.gmra.mxu0 %vm1192_vm8, %v1324_v27  ;;  %v1303_v30 = vpop.xlane.xlu0 %1302 }
 0x469   : > { %2207 = vrcp.f32 %v1303_v30 }
 0x46a   : > { %v1323_v31 = vpack.c.bf16 %v1319_v29, %v1319_v29 }
 0x46b   : > { %v2206_v32 = vpop.eup %2205 }
 0x46c   : > { %v1318_v33 = vmul.f32 %v2206_v32, %v2698_v58  ;;  %2003 = vmatmul.msk.bf16.vlgmr.msrb.gmra.mxu3 %vm1192_vm8, %v1323_v31 }
 0x46e   : > { %v1322_v34 = vpack.c.bf16 %v1318_v33, %v1318_v33 }
 0x46f   : > { %v2208_v35 = vpop.eup %2207 }
 0x470   : > { %v1317_v53 = vmul.f32 %v2208_v35, %v2702_v60  ;;  %2002 = vmatmul.msk.bf16.vlgmr.msrb.gmra.mxu2 %vm1192_vm8, %v1322_v34 }
 0x472   : > { %v1321_v36 = vpack.c.bf16 %v1317_v53, %v1317_v53 }
 0x474   : > { %2001 = vmatmul.msk.bf16.vlgmr.msrb.gmra.mxu1 %vm1192_vm8, %v1321_v36 }
 0x4e5   : > { %v1398_v48 = vpop.f32.mrf.mxu0 }
 0x4e6   : > { %v1414_v41 = vrot.slane %v1398_v48, 4 }
 0x4ed   : > { %v1400_v37 = vpop.f32.mrf.mxu0 }
 0x4ef   : > { %v1379_v38 = vpop.f32.mrf.mxu3 }
 0x4f0   : > { %v1402_v39 = vrot.slane %v1379_v38, 4 }
 0x4f1   : > { %v1341_v40 = vpop.f32.mrf.mxu1 }
 0x4f2   : > { %v1403_v42 = vsel %vm826_vm7, %v1402_v39, %v1341_v40  ;;  %v1404_v58 = vrot.slane %v1341_v40, 4 }
 0x4f3   : > { %v1409_v43 = vperm.slane %v1403_v42, %v2590_v55  ;;  %v1360_v44 = vpop.f32.mrf.mxu2 }
 0x4f4   : > { %v1405_v46 = vsel %vm826_vm7, %v1379_v38, %v1404_v58  ;;  %v1415_v60 = vsel %vm826_vm7, %v1414_v41, %v1360_v44  ;;  %v1416_v47 = vrot.slane %v1360_v44, 4  ;;  %v2067_v44 = vld [vmem:[%s2516_s29 + $0x8] sm:$0xff] }
 0x4f5   : > { %v1413_v49 = vperm.slane %v1405_v46, %v2590_v55  ;;  %v1428_v50 = vrot.slane %v1409_v43, 4  ;;  %v1421_v51 = vperm.slane %v1415_v60, %v2590_v55  ;;  %1559 = vmatpush.bf16.msra.mxu1 %v2067_v44  ;;  %v2066_v46 = vld [vmem:[%s2516_s29] sm:$0xff] }
 0x4f6   : > { %v1417_v4 = vsel %vm826_vm7, %v1398_v48, %v1416_v47 }
 0x4f7   : > { %v1440_v52 = vrot.slane %v1413_v49, 4  ;;  %v1425_v54 = vperm.slane %v1417_v4, %v2590_v55  ;;  %v1426_v56 = vrot.slane %v1421_v51, 4  ;;  %v1429_v45 = vsel %vm826_vm7, %v1421_v51, %v1428_v50  ;;  %v1381_v57 = vpop.f32.mrf.mxu3 }
 0x4f8   : > { %v1437_v59 = vperm.slane %v1429_v45, %v2600_v7 }
 0x4f9   : > { %v1427_v61 = vsel %vm826_vm7, %v1426_v56, %v1409_v43  ;;  %v1438_v62 = vrot.slane %v1425_v54, 4  ;;  %v1441_v0 = vsel %vm826_vm7, %v1425_v54, %v1440_v52  ;;  %v1343_v63 = vpop.f32.mrf.mxu1  ;;  %1560 = vmatpush.bf16.msra.mxu1 %v2066_v46  ;;  %v2184_v52 = vld [vmem:[%s2974_s22] ss:$0 sm:$0xff] }
 0x4fa   : > { %v1433_v1 = vperm.slane %v1427_v61, %v2600_v7  ;;  %v1449_v2 = vperm.slane %v1441_v0, %v2600_v7  ;;  %v1452_v3 = vrot.slane %v1437_v59, 4 }
 0x4fb   : > { %v1439_v5 = vsel %vm826_vm7, %v1438_v62, %v1413_v49  ;;  %v1362_v6 = vpop.f32.mrf.mxu2 }
 0x4fc   : > { %v1445_v9 = vperm.slane %v1439_v5, %v2600_v7  ;;  %v1450_v10 = vrot.slane %v1433_v1, 4  ;;  %v1453_v11 = vsel %vm826_vm7, 0.0, %v1452_v3  ;;  %v1456_v12 = vrot.slane %v1449_v2, 4  ;;  %v2069_v2 = vld [vmem:[%s2533_s24 + $0x8] sm:$0xff] }
 0x4fd   : > { %v1463_v13 = vrot.slane %v1453_v11, 4  ;;  %v1458_v18 = vsel %vm826_vm7, %v1452_v3, %v1433_v1  ;;  %1629 = vmatpush.bf16.msra.mxu2 %v2069_v2  ;;  %v2068_v3 = vld [vmem:[%s2533_s24] sm:$0xff] }
 0x4fe   : > { %v1451_v14 = vsel %vm826_vm7, 0.0, %v1450_v10  ;;  %v1454_v15 = vrot.slane %v1445_v9, 4  ;;  %v1457_v17 = vsel %vm826_vm7, 0.0, %v1456_v12  ;;  %v1469_v21 = vsel %vm826_vm7, %v1456_v12, %v1445_v9 }
 0x4ff   : > { %v1464_v19 = vsel %vm826_vm7, %v1463_v13, %v1451_v14  ;;  %v1474_v20 = vrot.slane %v1457_v17, 4  ;;  %v1473_v24 = vperm.slane %v1469_v21, %v2590_v55  ;;  %v1462_v26 = vperm.slane %v1458_v18, %v2590_v55  ;;  %v2185_v17 = vld [vmem:[%s2975_s18] ss:$0 sm:$0xff] }
 0x500   : > { %v1455_v22 = vsel %vm826_vm7, 0.0, %v1454_v15  ;;  %v1468_v23 = vperm.slane %v1464_v19, %v2590_v55 }
 0x501   : > { %v1475_v25 = vsel %vm826_vm7, %v1474_v20, %v1455_v22  ;;  %v1494_v29 = vrot.slane %v1473_v24, 4  ;;  %v1482_v36 = vrot.slane %v1462_v26, 4  ;;  %1630 = vmatpush.bf16.msra.mxu2 %v2068_v3  ;;  %v2186_v20 = vld [vmem:[%s704_s4] ss:$0 sm:$0xff] }
 0x502   : > { %v1479_v27 = vperm.slane %v1475_v25, %v2590_v55  ;;  %v1480_v28 = vrot.slane %v1468_v23, 4  ;;  %v2075_v25 = vld [vmem:[%s2547_s28 + $0x28] sm:$0xff] }
 0x503   : > { %v1483_v39 = vsel %vm826_vm7, %v1468_v23, %v1482_v36 }
 0x504   : > { %v1481_v30 = vsel %vm826_vm7, %v1480_v28, %v1462_v26  ;;  %v1492_v31 = vrot.slane %v1479_v27, 4  ;;  %v1495_v34 = vsel %vm826_vm7, %v1479_v27, %v1494_v29  ;;  %v1491_v41 = vperm.slane %v1483_v39, %v2600_v7  ;;  %v2074_v26 = vld [vmem:[%s2547_s28 + $0x20] sm:$0xff]  ;;  %v2073_v27 = vld [vmem:[%s2547_s28 + $0x18] sm:$0xff]  ;;  %v2072_v28 = vld [vmem:[%s2547_s28 + $0x10] sm:$0xff] }
 0x505   : > { %v1487_v32 = vperm.slane %v1481_v30, %v2600_v7  ;;  %v1503_v55 = vperm.slane %v1495_v34, %v2600_v7  ;;  %v2071_v29 = vld [vmem:[%s2547_s28 + $0x8] sm:$0xff]  ;;  %v2070_v30 = vld [vmem:[%s2547_s28] sm:$0xff] }
 0x506   : > { %v1493_v33 = vsel %vm826_vm7, %v1492_v31, %v1473_v24  ;;  %v1510_v58 = vrot.slane %v1491_v41, 4  ;;  %v2076_v24 = vld [vmem:[%s2547_s28 + $0x30] sm:$0xff]  ;;  %v2187_v31 = vld [vmem:[%s712_s27] ss:$0 sm:$0xff]  ;;  %s2976_s27 = sld [smem:[#allocation9_spill]] }
 0x507   : > { %v1499_v35 = vperm.slane %v1493_v33, %v2600_v7  ;;  %v1506_v53 = vrot.slane %v1487_v32, 4  ;;  %v1508_v40 = vrot.slane %v1503_v55, 4 }
 0x508   : > { %v1511_v43 = vsel %vm826_vm7, %v1503_v55, %v1510_v58 }
 0x509   : > { %v1504_v48 = vrot.slane %v1499_v35, 4  ;;  %v1507_v37 = vsel %vm826_vm7, %v1499_v35, %v1506_v53  ;;  %v1509_v42 = vsel %vm826_vm7, %v1508_v40, %v1491_v41 }
 0x50a   : > { %1513 = vrot.lane.b32.xlu0 %v1507_v37, %s2322_s14 }
 0x50b   : > { %v1505_v38 = vsel %vm826_vm7, %v1504_v48, %v1487_v32 }
 0x50c   : > { %p2055_p1 = scmp.ne.s32.totalorder %s2976_s27, 1 }
 0x50d   : > { %s2977_s6 = sld [smem:[#allocation24_spill]] (!%p2055_p1) }
 0x512   : > { %1517 = vrot.lane.b32.xlu0 %v1509_v42, %s2323_s30  ;;  %v2188_v42 = vld [vmem:[%s720_s16] ss:$0 sm:$0xff]  ;;  %s2978_s30 = sld [smem:[#allocation25_spill]] (!%p2055_p1) }
 0x51a   : > { %1521 = vrot.lane.b32.xlu0 %v1511_v43, %s2324_s0 }
 0x57c   : > { %v1514_v60 = vpop.permute.xlu0 %1513 }
 0x57d   : > { %v1524_v7 = vsel %vm1192_vm8, %v1505_v38, %v1514_v60 }
 0x584   : > { %v1518_v47 = vpop.permute.xlu0 %1517 }
 0x585   : > { %v1526_v49 = vsel %vm1525_vm10, %v1524_v7, %v1518_v47 }
 0x58c   : > { %v1522_v50 = vpop.permute.xlu0 %1521 }
 0x58d   : > { %v1528_v51 = vsel %vm1527_vm11, %v1526_v49, %v1522_v50 }
 0x58e   : > { %v1529_v4 = vpack.c.bf16 %v1528_v51, %v1528_v51 }
 0x590   : > { %2013 = vmatmul.msk.bf16.vlgmr.msra.gmra.mxu1 %vm740_vm2, %v1529_v4 }
 0x60d   : > { %v1562_v54 = vpop.f32.mrf.mxu1 }
 0x60e   : > { %v1563_v56 = vadd.f32 %v2184_v52, %v1562_v54 }
 0x610   : > { %v2808_v45 = vadd.f32 %v1563_v56, %v2554_v8  ;;  %v2077_v8 = vld [vmem:[%s2547_s28 + $0x38] sm:$0xff] }
 0x611   : > { %1714 = vmatpush.bf16.msra.mxu3 %v2077_v8 }
 0x612   : > { %v1569_v57 = vsel %vm740_vm2, %v2808_v45, 0.0 }
 0x613   : > { %1570 = vadd.xlane.f32.xlu1 %v1569_v57 }
 0x615   : > { %v1564_v59 = vpop.f32.mrf.mxu1  ;;  %1715 = vmatpush.bf16.msra.mxu3 %v2076_v24 }
 0x619   : > { %1716 = vmatpush.bf16.msra.mxu3 %v2075_v25 }
 0x61d   : > { %1717 = vmatpush.bf16.msra.mxu3 %v2074_v26 }
 0x621   : > { %1718 = vmatpush.bf16.msra.mxu3 %v2073_v27 }
 0x625   : > { %1719 = vmatpush.bf16.msra.mxu3 %v2072_v28 }
 0x629   : > { %1720 = vmatpush.bf16.msra.mxu3 %v2071_v29 }
 0x62d   : > { %1721 = vmatpush.bf16.msra.mxu3 %v2070_v30 }
 0x686   : > { %v1571_v61 = vpop.xlane.xlu1 %1570 }
 0x687   : > { %v1572_v62 = vmul.f32 %v1571_v61, %v2558_v16 }
 0x689   : > { %v1573_v0 = vsub.f32 %v2808_v45, %v1572_v62 }
 0x68b   : > { %v1574_v63 = vmul.f32 %v1573_v0, %v1573_v0 }
 0x68d   : > { %v1575_v1 = vsel %vm740_vm2, %v1574_v63, 0.0 }
 0x68e   : > { %1576 = vadd.xlane.f32.xlu0 %v1575_v1 }
 0x701   : > { %v1577_v5 = vpop.xlane.xlu0 %1576 }
 0x702   : > { %v1578_v6 = vmul.f32 %v1577_v5, %v2558_v16 }
 0x704   : > { %v1579_v9 = vadd.f32 1e-05, %v1578_v6 }
 0x706   : > { %2209 = vrsqrt.f32 %v1579_v9  ;;  %vm1586_vm13 = vweird.f32 %v1579_v9 }
 0x70c   : > { %v2210_v10 = vpop.eup %2209 }
 0x70d   : > { %v1581_v11 = vmul.f32 %v2210_v10, %v1579_v9  ;;  %vm1587_vm12 = vweird.f32 %v2210_v10 }
 0x70e   : > { %vm1588_vm14 = vmor %vm1586_vm13, %vm1587_vm12 }
 0x70f   : > { %v1582_v12 = vmul.f32 %v2210_v10, %v1581_v11 }
 0x711   : > { %v1583_v13 = vmul.f32 0.5, %v1582_v12 }
 0x713   : > { %v1584_v14 = vsub.f32 1.5, %v1583_v13 }
 0x715   : > { %v1585_v15 = vmul.f32 %v2210_v10, %v1584_v14 }
 0x717   : > { %v1589_v18 = vsel %vm1588_vm14, %v2210_v10, %v1585_v15 }
 0x718   : > { %v1590_v19 = vmul.f32 %v1589_v18, %v1573_v0 }
 0x71a   : > { %v1594_v21 = vmul.f32 %v2185_v17, %v1590_v19 }
 0x71c   : > { %v1598_v22 = vadd.f32 %v2186_v20, %v1594_v21 }
 0x71e   : > { %v1599_v23 = vpack.c.bf16 %v1598_v22, %v1598_v22 }
 0x720   : > { %2022 = vmatmul.msk.bf16.vlgmr.msra.gmra.mxu2 %vm740_vm2, %v1599_v23 }
 0x7a3   : > { %v1632_v32 = vpop.f32.mrf.mxu2 }
 0x7a4   : > { %v1633_v33 = vadd.f32 %v2187_v31, %v1632_v32 }
 0x7a6   : > { %v1636_v34 = vmul.f32 %v1633_v33, %v1633_v33 }
 0x7a8   : > { %v1637_v35 = vmul.f32 %v1636_v34, %v1633_v33 }
 0x7aa   : > { %v1638_v53 = vmul.f32 0.044715, %v1637_v35 }
 0x7ab   : > { %v1634_v36 = vpop.f32.mrf.mxu2 }
 0x7ac   : > { %v1639_v48 = vadd.f32 %v1638_v53, %v1633_v33 }
 0x7ae   : > { %v1640_v37 = vmul.f32 0.7978846, %v1639_v48 }
 0x7b0   : > { %2211 = vtanh.f32 %v1640_v37 }
 0x7b6   : > { %v2212_v55 = vpop.eup %2211 }
 0x7b7   : > { %v1642_v38 = vadd.f32 1.0, %v2212_v55 }
 0x7b9   : > { %v1643_v39 = vmul.f32 0.5, %v1642_v38 }
 0x7bb   : > { %v1644_v40 = vmul.f32 %v1643_v39, %v1633_v33 }
 0x7bd   : > { %v1645_v41 = vpack.c.bf16 %v1644_v40, %v1644_v40 }
 0x7bf   : > { %1722 = vmatmul.bf16.vlgmr.msra.gmra.mxu3 %v1645_v41 }
 0x842   : > { %v1723_v58 = vpop.f32.mrf.mxu3 }
 0x843   : > { %v1724_v43 = vadd.f32 %v2188_v42, %v1723_v58 }
 0x845   : > { %v1727_v44 = vadd.f32 %v1724_v43, %v2808_v45 }
 0x846   : > { %1732 = sbr.rel (%p2055_p1) target bundleno = 2392 (0x958), region = 92 }
 0x847   : > { %1728 = vst.msk [vmem:[#allocation2] sm:$0xff] %vm740_vm2, %v1727_v44 }
 0x84a   : > { %v1725_v46 = vpop.f32.mrf.mxu3 }
 0x84b   : > { %v1735_v60 = vsel %vm740_vm2, %v1727_v44, 0.0  ;;  %v2213_v0 = vld [vmem:[%s2977_s6] ss:$0 sm:$0xff] }
 0x84c   : > { %1736 = vadd.xlane.f32.xlu0 %v1735_v60 }
 0x8bf   : > { %v1737_v47 = vpop.xlane.xlu0 %1736 }
 0x8c0   : > { %v1738_v7 = vmul.f32 %v1737_v47, %v2558_v16 }
 0x8c2   : > { %v1739_v49 = vsub.f32 %v1727_v44, %v1738_v7 }
 0x8c4   : > { %v1740_v50 = vmul.f32 %v1739_v49, %v1739_v49 }
 0x8c6   : > { %v1741_v51 = vsel %vm740_vm2, %v1740_v50, 0.0 }
 0x8c7   : > { %1742 = vadd.xlane.f32.xlu0 %v1741_v51 }
 0x93a   : > { %v1743_v4 = vpop.xlane.xlu0 %1742 }
 0x93b   : > { %v1744_v52 = vmul.f32 %v1743_v4, %v2558_v16  ;;  %v2214_v16 = vld [vmem:[%s2978_s30] ss:$0 sm:$0xff] }
 0x93d   : > { %v1745_v54 = vadd.f32 1e-05, %v1744_v52 }
 0x93f   : > { %2215 = vrsqrt.f32 %v1745_v54  ;;  %vm1752_vm0 = vweird.f32 %v1745_v54 }
 0x945   : > { %v2216_v56 = vpop.eup %2215 }
 0x946   : > { %v1747_v45 = vmul.f32 %v2216_v56, %v1745_v54  ;;  %vm1753_vm15 = vweird.f32 %v2216_v56 }
 0x947   : > { %vm1754_vm1 = vmor %vm1752_vm0, %vm1753_vm15 }
 0x948   : > { %v1748_v57 = vmul.f32 %v2216_v56, %v1747_v45 }
 0x94a   : > { %v1749_v59 = vmul.f32 0.5, %v1748_v57 }
 0x94c   : > { %v1750_v61 = vsub.f32 1.5, %v1749_v59 }
 0x94e   : > { %v1751_v62 = vmul.f32 %v2216_v56, %v1750_v61 }
 0x950   : > { %v1755_v63 = vsel %vm1754_vm1, %v2216_v56, %v1751_v62 }
 0x951   : > { %v1756_v1 = vmul.f32 %v1755_v63, %v1739_v49 }
 0x953   : > { %v1760_v2 = vmul.f32 %v2213_v0, %v1756_v1 }
 0x955   : > { %v1764_v3 = vadd.f32 %v2214_v16, %v1760_v2 }
 0x957   : > { %1765 = vst.msk [vmem:[%s672_s15] sm:$0xff] %vm740_vm2, %v1764_v3 }
 0x958 PF: > { %s2979_s0 = sld [smem:[#allocation10_spill]]  ;;  %s1779_s3 = sshll.u32 %s672_s15, 4  ;;  %s1780_s3 = int_to_ptr.vmem [resolvable:$true] %s1779_s3 }
 0x959   : > { %s2980_s21 = sld [smem:[#allocation7_spill]] }
 0x95a   : > { %s2982_s18 = sld [smem:[#allocation26_spill]] }
 0x95e   : > { %s2057_s22 = sshll.u32 %s2979_s0, 3 }
 0x95f   : > { %s2983_s25 = sand.u32 1, %s2980_s21  }
 0x960   : > { %s1777_s17 = scalar_lea.hbm %s2982_s18, %s2057_s22  ;;  %s1767_s28 = scalar_lea.sflag [#allocation4], %s2983_s25 }
 0x961   : > { %s1781_s4 = sshll.u32 %s1777_s17, 4  ;;  %s2237_s6 = scalar_lea.hbm %s2982_s18, 16  ;;  %s1782_s4 = int_to_ptr.hbm [resolvable:$true] %s1781_s4 }
 0x962   : > { %s2231_s1 = sshra.s32 %s1782_s4, 4  ;;  %s2232_s1 = int_to_ptr.hbm [resolvable:$true] %s2231_s1 }
 0x963   : > { %s2233_s27 = scalar_lea.hbm %s2232_s1, 8  ;;  %p2238_p6 = scmp.lt.s32.totalorder %s2232_s1, %s2982_s18 }
 0x964   : > { %p2234_p2 = scmp.ne.s32.totalorder %s2232_s1, %s2233_s27  ;;  %p2239_p7 = scmp.lt.s32.totalorder %s2237_s6, %s2233_s27 }
 0x966   : > { %p2235_p4 = pnand %p2234_p2, %p2459_p3  ;;  %p2240_p8 = por %p2239_p7, %p2238_p6 }
 0x968   : > { %p2236_p5 = pneg %p2235_p4 }
 0x96a   : > { %p2241_p10 = pnand %p2240_p8, %p2236_p5 }
 0x96c   : > { %2244 = shalt.err (!%p2241_p10)
}
 0x96d   : > { %2078 = dma.vmem_to_hbm [thread:$0]  (%p2459_p3), %s1780_s3, 128, %s1782_s4, %s1767_s28  }
 0x96e PF: > { %s2984_s26 = sld [smem:[#allocation13_spill]] }
 0x96f   : > { %s2985_s15 = sld [smem:[#allocation6_spill]] }
 0x974   : > { %p2084_p11 = scmp.ge.s32.totalorder %s2984_s26, 2 }
 0x975   : > { %s1793_s0 = sand.u32 1, %s2985_s15  }
 0x976   : > { %p2081_p12 = pnand %p2084_p11, %p2469_p9  ;;  %s1794_s21 = scalar_lea.sflag [#allocation4], %s1793_s0 }
 0x978   : > { %p2082_p13 = pneg %p2081_p12 }
 0x97a   : > { %2278 = dma.done.wait (%p2082_p13), %s1794_s21, 128  }
 0x97b   : > { %2280 = vsyncadd (%p2082_p13), %s1794_s21, 4294967168  ;;  %s29_s28 = sadd.s32 1, %s2984_s26   ;;  %s2987_s21 = sld [smem:[#allocation7_spill]] }
 0x97c   : > { %p26_p0 = scmp.ge.s32.totalorder %s29_s28, 6   ;;  %s2988_s22 = sld [smem:[#allocation8_spill]] }
 0x97d   : > { %s2989_s23 = sld [smem:[#allocation18_spill]] }
 0x97e   : > { %s2990_s24 = sld [smem:[#allocation11_spill]]  ;;  %28 = sbr.rel (!%p26_p0) target bundleno = 14 (0xe), region = 163 }
 0x97f   : > { %s2991_s25 = sld [smem:[#allocation12_spill]] }
 0x980   : > { %s2992_s26 = sld [smem:[#allocation14_spill]] }
 0x981   : > { %s2993_s27 = sld [smem:[#allocation16_spill]] }
 0x983   :  { %1800 = vsyncpa [#allocation4], 1 }
 0x984   :  { %1802 = vsyncpa [#allocation4 + $0x1], 1 }

</bundles_post_ra>
